<compile_context>
chip_gen: v7x
topology: tpu7x:2x2x1
jax: 0.10.0
libtpu: 0.0.40
codegen_flags: <defaults>
</compile_context>

<pallas_src>
import functools

import jax
import jax.numpy as jnp
import numpy as np
from jax.experimental import pallas as pl
from jax.experimental.pallas import tpu as pltpu


def _recon_kernel(x_ref, o_ref, *, r, W):
    """One batch element per grid step.

    x_ref: (1, R, K)   rows = (channel, h, dh) flattened (R = 25*H*r),
                       cols = (dw, w) flattened          (K = r*W)
    o_ref: (1, R, Wr)  pixel-shuffled rows, lane-dense last dim (Wr = W*r)

    The pixel-shuffle lane interleave out[row, w*r+dw] = x[row, dw*W+w] is a fixed
    lane permutation, applied as a single one-hot scatter matmul on the MXU.
    """
    K = x_ref.shape[2]
    Wr = o_ref.shape[2]

    # One-hot scatter S[k, y] = 1  iff  y == (k % W) * r + (k // W).
    # Built with compares only (no vector integer div/mod needed on the VPU).
    k_idx = jax.lax.broadcasted_iota(jnp.int32, (K, Wr), 0)
    y_idx = jax.lax.broadcasted_iota(jnp.int32, (K, Wr), 1)
    dw = jnp.zeros_like(k_idx)
    for m in range(1, r):                       # static, tiny (r-1 compares)
        dw = dw + (k_idx >= m * W).astype(jnp.int32)
    w = k_idx - dw * W
    onehot = (y_idx == w * r + dw)

    a = x_ref[0]
    if a.dtype == jnp.float32:
        # Exact f32 path: bf16x3 split, three native-bf16 MXU passes, f32 accum.
        scat = jnp.where(onehot, 1.0, 0.0).astype(jnp.bfloat16)
        a0 = a.astype(jnp.bfloat16)
        r1 = a - a0.astype(jnp.float32)
        a1 = r1.astype(jnp.bfloat16)
        a2 = (r1 - a1.astype(jnp.float32)).astype(jnp.bfloat16)
        acc = jnp.dot(a0, scat, preferred_element_type=jnp.float32)
        acc = acc + jnp.dot(a1, scat, preferred_element_type=jnp.float32)
        acc = acc + jnp.dot(a2, scat, preferred_element_type=jnp.float32)
    else:
        # Narrow dtypes (e.g. bf16) stay in their native dtype end to end.
        scat = jnp.where(onehot, 1.0, 0.0).astype(a.dtype)
        acc = jnp.dot(a, scat, preferred_element_type=jnp.float32)

    o_ref[0] = acc.astype(o_ref.dtype)


@functools.partial(jax.jit, static_argnums=(1,))
def recon_block(pic_in, upscale_factor):
    """JAX/Pallas equivalent of ReconBlock.forward."""
    r = upscale_factor
    B, C, d2, d3, H, W = pic_in.shape
    assert C == 25 * r * r, "ReconBlock requires C == 25 * upscale_factor**2"
    Hr, Wr = H * r, W * r
    R = 25 * Hr            # output rows per batch element (channel-major)
    K = r * W              # contraction dim of the one-hot scatter matmul

    # Layout plumbing (pure XLA glue, fused with the [:, :, 0, 0] slice/regroup
    # copy that is needed anyway): rows ordered as (channel, h, dh) so every
    # output row maps to exactly one input row; cols ordered as (dw, w) so the
    # remaining lane interleave is a single one-hot matmul inside the kernel.
    xs = pic_in[:, :, 0, 0, :, :].reshape(B, 25, r, r, H, W)       # [b,c,dh,dw,h,w]
    al = jnp.transpose(xs, (0, 1, 4, 2, 3, 5)).reshape(B, R, K)    # [b,(c,h,dh),(dw,w)]

    kernel = functools.partial(_recon_kernel, r=r, W=W)
    out = pl.pallas_call(
        kernel,
        out_shape=jax.ShapeDtypeStruct((B, R, Wr), pic_in.dtype),
        grid_spec=pltpu.PrefetchScalarGridSpec(
            num_scalar_prefetch=0,
            grid=(B,),                                   # one step per batch element
            in_specs=[pl.BlockSpec((1, R, K), lambda b: (b, 0, 0))],
            out_specs=pl.BlockSpec((1, R, Wr), lambda b: (b, 0, 0)),
        ),
        compiler_params=pltpu.CompilerParams(
            dimension_semantics=("parallel",)),          # B steps shard across TCs
    )(al)

    # Free (contiguous) reshape: rows (c, i) -> channels (5, 5) x rows Hr.
    return out.reshape(B, 5, 5, Hr, Wr)


def recon_block_ref(pic_in, upscale_factor):
    """Pure-JAX reference (torch.pixel_shuffle semantics)."""
    r = upscale_factor
    B, C, d2, d3, H, W = pic_in.shape
    buf = pic_in[:, :, 0, 0, :, :]
    ps = buf.reshape(B, 25, r, r, H, W)
    ps = jnp.transpose(ps, (0, 1, 4, 2, 5, 3)).reshape(B, 25, H * r, W * r)
    return ps.reshape(B, 5, 5, H * r, W * r)


if __name__ == "__main__":
    upscale_factor = 2
    B, d2, d3, H, W = 2, 2, 3, 8, 64       # W chosen so Wr = 128 (lane-dense stores)
    C = 25 * upscale_factor * upscale_factor   # 100

    key = jax.random.PRNGKey(0)
    # True float32 input (no bf16 pre-rounding): the kernel must reproduce it exactly.
    x = jax.random.normal(key, (B, C, d2, d3, H, W), dtype=jnp.float32)

    out = jax.block_until_ready(recon_block(x, upscale_factor))
    ref = jax.block_until_ready(recon_block_ref(x, upscale_factor))

    assert out.shape == (B, 5, 5, H * upscale_factor, W * upscale_factor)
    np.testing.assert_allclose(np.asarray(out), np.asarray(ref),
                               rtol=1e-6, atol=1e-6)
    print("KERNEL_OK")
</pallas_src>

<mosaic_0001>
module attributes {stable_mosaic.version = 11 : i64} {
  func.func @_recon_kernel(%arg0: i32, %arg1: memref<1x400x128xf32, #tpu.memory_space<vmem>>, %arg2: memref<1x400x128xf32, #tpu.memory_space<vmem>>) attributes {dimension_semantics = [#tpu.dimension_semantics<parallel>], iteration_bounds = array<i64: 2>, scalar_prefetch = 0 : i64, scratch_operands = 0 : i64, tpu.core_type = #tpu.core_type<tc>, window_params = [{transform_indices = @transform_0, window_bounds = array<i64: 1, 400, 128>}, {transform_indices = @transform_1, window_bounds = array<i64: 1, 400, 128>}]} {
    %0 = tpu.iota {dimensions = array<i32: 0>} : vector<128x128xi32>
    %1 = tpu.iota {dimensions = array<i32: 1>} : vector<128x128xi32>
    %c0_i32 = arith.constant 0 : i32
    %2 = vector.broadcast %c0_i32 : i32 to vector<128x128xi32>
    %c64_i32 = arith.constant 64 : i32
    %3 = vector.broadcast %c64_i32 : i32 to vector<128x128xi32>
    %4 = arith.cmpi sge, %0, %3 : vector<128x128xi32>
    %5 = arith.extui %4 : vector<128x128xi1> to vector<128x128xi32>
    %6 = arith.addi %2, %5 : vector<128x128xi32>
    %c64_i32_0 = arith.constant 64 : i32
    %7 = vector.broadcast %c64_i32_0 : i32 to vector<128x128xi32>
    %8 = arith.muli %6, %7 : vector<128x128xi32>
    %9 = arith.subi %0, %8 : vector<128x128xi32>
    %c2_i32 = arith.constant 2 : i32
    %10 = vector.broadcast %c2_i32 : i32 to vector<128x128xi32>
    %11 = arith.muli %9, %10 : vector<128x128xi32>
    %12 = arith.addi %11, %6 : vector<128x128xi32>
    %13 = arith.cmpi eq, %1, %12 : vector<128x128xi32>
    %c0 = arith.constant 0 : index
    %c0_1 = arith.constant 0 : index
    %c0_2 = arith.constant 0 : index
    %14 = vector.load %arg1[%c0, %c0_1, %c0_2] : memref<1x400x128xf32, #tpu.memory_space<vmem>>, vector<1x400x128xf32>
    %15 = vector.shape_cast %14 : vector<1x400x128xf32> to vector<400x128xf32>
    %cst = arith.constant 1.000000e+00 : f32
    %cst_3 = arith.constant 0.000000e+00 : f32
    %16 = vector.broadcast %cst : f32 to vector<128x128xf32>
    %17 = vector.broadcast %cst_3 : f32 to vector<128x128xf32>
    %18 = arith.select %13, %16, %17 : vector<128x128xi1>, vector<128x128xf32>
    %19 = arith.truncf %18 : vector<128x128xf32> to vector<128x128xbf16>
    %20 = arith.truncf %15 : vector<400x128xf32> to vector<400x128xbf16>
    %21 = arith.extf %20 : vector<400x128xbf16> to vector<400x128xf32>
    %22 = arith.subf %15, %21 : vector<400x128xf32>
    %23 = arith.truncf %22 : vector<400x128xf32> to vector<400x128xbf16>
    %24 = arith.extf %23 : vector<400x128xbf16> to vector<400x128xf32>
    %25 = arith.subf %22, %24 : vector<400x128xf32>
    %26 = arith.truncf %25 : vector<400x128xf32> to vector<400x128xbf16>
    %cst_4 = arith.constant dense<0.000000e+00> : vector<400x128xf32>
    %27 = tpu.matmul %20, %19, %cst_4 {dimension_numbers = #tpu.dot_dimension_numbers<[1], [0], [0], [1], [0, 0, 1, 1], [], []>} : vector<400x128xbf16>, vector<128x128xbf16>, vector<400x128xf32> -> vector<400x128xf32>
    %cst_5 = arith.constant dense<0.000000e+00> : vector<400x128xf32>
    %28 = tpu.matmul %23, %19, %cst_5 {dimension_numbers = #tpu.dot_dimension_numbers<[1], [0], [0], [1], [0, 0, 1, 1], [], []>} : vector<400x128xbf16>, vector<128x128xbf16>, vector<400x128xf32> -> vector<400x128xf32>
    %29 = arith.addf %27, %28 : vector<400x128xf32>
    %cst_6 = arith.constant dense<0.000000e+00> : vector<400x128xf32>
    %30 = tpu.matmul %26, %19, %cst_6 {dimension_numbers = #tpu.dot_dimension_numbers<[1], [0], [0], [1], [0, 0, 1, 1], [], []>} : vector<400x128xbf16>, vector<128x128xbf16>, vector<400x128xf32> -> vector<400x128xf32>
    %31 = arith.addf %29, %30 : vector<400x128xf32>
    %c0_7 = arith.constant 0 : index
    %c0_8 = arith.constant 0 : index
    %c0_9 = arith.constant 0 : index
    %32 = vector.load %arg2[%c0_7, %c0_8, %c0_9] : memref<1x400x128xf32, #tpu.memory_space<vmem>>, vector<1x400x128xf32>
    %33 = vector.shape_cast %32 : vector<1x400x128xf32> to vector<400x128xf32>
    %34 = vector.shape_cast %31 : vector<400x128xf32> to vector<1x400x128xf32>
    tpu.vector_store %arg2[%c0_7, %c0_8, %c0_9], %34 {strides = array<i32>} : memref<1x400x128xf32, #tpu.memory_space<vmem>>, vector<1x400x128xf32>,
    return
  }
  func.func @transform_0(%arg0: i32) -> (i32, i32, i32) {
    %c0_i32 = arith.constant 0 : i32
    %c0_i32_0 = arith.constant 0 : i32
    %c0_i32_1 = arith.constant 0 : i32
    return %arg0, %c0_i32, %c0_i32_0 : i32, i32, i32
  }
  func.func @transform_1(%arg0: i32) -> (i32, i32, i32) {
    %c0_i32 = arith.constant 0 : i32
    %c0_i32_0 = arith.constant 0 : i32
    %c0_i32_1 = arith.constant 0 : i32
    return %arg0, %c0_i32, %c0_i32_0 : i32, i32, i32
  }
}

</mosaic_0001>

<bundles_post_ra>
// kernel: recon_block.1
= control target key start
LH: loop header
LB: loop body
LE: loop exit
PB: predicated region body
PF: predicated region fallthrough
CT: control target
= control target key end

     0   :  { %6 = vsyncpa [#allocation3], 0  ;;  %s3356_s0 = inlined_call_operand.vmem [shape: f32[2,400,128], index: 0, kind: input, shape index: {}]   ;;  %s3357_s1 = inlined_call_operand.hbm [shape: f32[2,400,128], index: 1, kind: output, shape index: {}]  }
   0x1   :  { %8 = vsyncpa [#allocation3 + $0x1], 0  ;;  %s2275_s6 = smov 0   ;;  %s2277_s7 = smov 0  }
   0x2   :  { %s2279_s8 = smov 0   ;;  %s2281_s9 = smov 0  }
   0x3 LB: > { %s2296_s10 = sadd.s32 4294967295, %s2257_s9   ;;  %s1471_s11 = sadd.s32 4294967294, %s2257_s9   ;;  %s2257_s9 = sphi %s2281_s9, %s3384_s9   ;;  %s2253_s8 = sphi %s2279_s8, %s3383_s8   ;;  %s2249_s7 = sphi %s2277_s7, %s3382_s7   ;;  %s2245_s6 = sphi %s2275_s6, %s3381_s6  }
   0x4   : > { %s2300_s12 = sadd.s32 1, %s2257_s9   ;;  %s47_s13 = sadd.s32 1, %s2253_s8 }
   0x5   : > { %s44_s14 = ssub.s32 %s2257_s9, %s2300_s12  ;;  %p57_p0 = scmp.ne.s32.totalorder %s2253_s8, %s2249_s7 }
   0x6   : > { %p45_p1 = scmp.eq.s32.totalorder %s44_s14, 0  ;;  %p58_p2 = scmp.eq.s32.totalorder %s2296_s10, 1 }
   0x7   : > { %p63_p3 = scmp.ne.s32.totalorder %s2249_s7, %s2245_s6  ;;  %p64_p4 = scmp.eq.s32.totalorder %s1471_s11, 1 }
   0x8   : > { %s2311_s15 = scalar_select %p45_p1, %s2253_s8, %s47_s13  }
   0x9   : > { %p2313_p5 = por %p58_p2, %p57_p0  ;;  %p2317_p6 = por %p64_p4, %p63_p3 }
   0xa   : > { %p1474_p7 = scmp.ge.s32.totalorder %s2257_s9, 1  ;;  %p90_p8 = scmp.lt.s32.totalorder %s2257_s9, 3 }
   0xc   : > { %p91_p9 = pnand %p1474_p7, %p90_p8 }
   0xd   : > { %v116_v0 = vlaneseq (!%p91_p9)  ;;  %p110_p10 = scmp.lt.s32.totalorder (!%p91_p9), %s2296_s10, 1  ;;  %v2259_v1 = vmov (!%p91_p9), 0.0   ;;  %vm2260_vm0 = vmmov (!%p91_p9), 0   ;;  %v2261_v22 = vmov (!%p91_p9), 1.0|1.0   ;;  %s107_s23 = sand.u32 (!%p91_p9), 1, %s2249_s7  }
   0xe   : > { %94 = sbr.rel (%p91_p9) target bundleno = 581 (0x245), region = 24  ;;  %1634 = vmatprep.subr.bf16.mxu1 (!%p91_p9), %v2259_v1  ;;  %1750 = vmatprep.subr.bf16.mxu0 (!%p91_p9), %v2259_v1  ;;  %s3315_s2 = scalar_lea.sflag (!%p91_p9), [#allocation3], %s107_s23 }
   0xf   : > { %v2326_v2 = vshrl.u32 (!%p91_p9), %v116_v0, 7  ;;  %v2328_v3 = vand.u32 (!%p91_p9), 127, %v116_v0  ;;  %1650 = vmatprep.mubr.msk.bf16.mxu1 (!%p91_p9), %vm2260_vm0, %v2259_v1  ;;  %1766 = vmatprep.mubr.msk.bf16.mxu0 (!%p91_p9), %vm2260_vm0, %v2259_v1  ;;  %s2148_s24 = smul.u32 (!%p91_p9), 400, %s107_s23  ;;  %s2262_s4 = smov (!%p91_p9), [#allocation2]  }
  0x10   : > { %s2150_s26 = smul.u32 (!%p91_p9), 6400, %s2296_s10  ;;  %s2199_s5 = sshll.u32 (!%p91_p9), %s2262_s4, 4  ;;  %s2200_s5 = int_to_ptr.vmem [resolvable:$false] %s2199_s5 }
  0x11   : > { %v118_v4 = vadd.s32 (!%p91_p9), 8, %v2326_v2  ;;  %v199_v5 = vmul.u32 (!%p91_p9), 2, %v2326_v2  ;;  %v119_v6 = vadd.s32 (!%p91_p9), 16, %v2326_v2  ;;  %v120_v7 = vadd.s32 (!%p91_p9), 24, %v2326_v2  ;;  %s3227_s25 = scalar_lea.vmem (!%p91_p9), [#allocation2], %s2148_s24 }
  0x12   : > { %v121_v8 = vadd.s32 (!%p91_p9), 32, %v2326_v2  ;;  %v122_v9 = vadd.s32 (!%p91_p9), 40, %v2326_v2  ;;  %v123_v10 = vadd.s32 (!%p91_p9), 48, %v2326_v2  ;;  %v124_v11 = vadd.s32 (!%p91_p9), 56, %v2326_v2  ;;  %s1409_s27 = sshll.u32 (!%p91_p9), %s3227_s25, 4  ;;  %s3307_s30 = scalar_lea.hbm (!%p91_p9), %s3357_s1, %s2150_s26  ;;  %s3309_s27 = int_to_ptr.vmem [resolvable:$true] %s1409_s27 }
  0x13   : > { %v200_v12 = vmul.u32 (!%p91_p9), 2, %v118_v4  ;;  %vm231_vm1 = vcmp.eq.s32.totalorder (!%p91_p9), %v2328_v3, %v199_v5  ;;  %v201_v13 = vmul.u32 (!%p91_p9), 2, %v119_v6  ;;  %v125_v14 = vadd.s32 (!%p91_p9), 64, %v2326_v2  ;;  %s2195_s3 = scalar_lea.vmem (!%p91_p9), %s3309_s27, 6400  ;;  %p2202_p0 = scmp.lt.s32.totalorder (!%p91_p9), %s3309_s27, %s2200_s5 }
  0x14   : > { %v202_v15 = vmul.u32 (!%p91_p9), 2, %v120_v7  ;;  %v203_v16 = vmul.u32 (!%p91_p9), 2, %v121_v8  ;;  %v126_v17 = vadd.s32 (!%p91_p9), 72, %v2326_v2  ;;  %v127_v18 = vadd.s32 (!%p91_p9), 80, %v2326_v2  ;;  %p2196_p11 = scmp.ne.s32.totalorder (!%p91_p9), %s3309_s27, %s2195_s3 }
  0x15   : > { %s2335_s18 = scalar_select %p110_p10, %s2296_s10, 1  ;;  %vm232_vm2 = vcmp.eq.s32.totalorder %v2328_v3, %v200_v12  ;;  %vm233_vm3 = vcmp.eq.s32.totalorder %v2328_v3, %v201_v13  ;;  %v204_v19 = vmul.u32 2, %v122_v9  ;;  %v1476_v21 = vadd.s32 4294967232, %v125_v14 }
  0x16   : > { %vm2352_vm4 = vmpackc.low %vm232_vm2, %vm231_vm1  ;;  %vm234_vm5 = vcmp.eq.s32.totalorder %v2328_v3, %v202_v15  ;;  %vm2364_vm6 = vcmp.eq.s32.totalorder %v2328_v3, %v203_v16  ;;  %v205_v24 = vmul.u32 2, %v123_v10  ;;  %v1477_v25 = vadd.s32 4294967232, %v126_v17  ;;  %p2197_p12 = pnand %p2196_p11, %p2313_p5  ;;  %s2201_s10 = scalar_lea.vmem %s2200_s5, 12800 }
  0x17   : > { %s2149_s19 = smul.u32 400, %s2335_s18  ;;  %1635 = vmatpush3.bf16.msk.msra.mxu1 %vm2352_vm4, %v2261_v22  ;;  %1751 = vmatpush3.bf16.msk.msra.mxu0 %vm2352_vm4, %v2261_v22  ;;  %v128_v26 = vadd.s32 88, %v2326_v2  ;;  %vm2371_vm7 = vmpackc.low %vm234_vm5, %vm233_vm3  ;;  %v206_v28 = vmul.u32 2, %v124_v11  ;;  %v207_v29 = vmul.u32 2, %v1476_v21  ;;  %v1478_v30 = vadd.s32 4294967232, %v127_v18  ;;  %p2203_p1 = scmp.lt.s32.totalorder %s2201_s10, %s2195_s3 }
  0x18   : > { %1636 = vmatprep.subr.bf16.mxu1 %v2259_v1  ;;  %1752 = vmatprep.subr.bf16.mxu0 %v2259_v1  ;;  %v129_v31 = vadd.s32 96, %v2326_v2  ;;  %vm236_vm8 = vcmp.eq.s32.totalorder %v2328_v3, %v204_v19  ;;  %v208_v32 = vmul.u32 2, %v1477_v25  ;;  %v130_v34 = vadd.s32 104, %v2326_v2  ;;  %p2198_p13 = pneg %p2197_p12 }
  0x19   : > { %s2379_s22 = scalar_lea.vmem %s3356_s0, %s2149_s19  ;;  %v1479_v33 = vadd.s32 4294967232, %v128_v26  ;;  %v223_v35 = vadd.s32 1, %v207_v29  ;;  %v131_v36 = vadd.s32 112, %v2326_v2  ;;  %vm2396_vm9 = vmpackc.low %vm236_vm8, %vm2364_vm6  ;;  %vm2401_vm10 = vcmp.eq.s32.totalorder %v2328_v3, %v205_v24  ;;  %p2204_p2 = por %p2203_p1, %p2202_p0 }
  0x1a   : > { %v247_v37 = vld [vmem:[%s2379_s22] sm:$0xff]  ;;  %v248_v38 = vld [vmem:[%s2379_s22 + $0x8] sm:$0xff]  ;;  %vm238_vm11 = vcmp.eq.s32.totalorder %v2328_v3, %v206_v28  ;;  %v209_v41 = vmul.u32 2, %v1478_v30  ;;  %v1480_v42 = vadd.s32 4294967232, %v129_v31  ;;  %v224_v43 = vadd.s32 1, %v208_v32  ;;  %v249_v59 = vld [vmem:[%s2379_s22 + $0x10] sm:$0xff] }
  0x1b   : > { %1637 = vmatpush3.bf16.msk.msra.mxu1 %vm2371_vm7, %v2261_v22  ;;  %1753 = vmatpush3.bf16.msk.msra.mxu0 %vm2371_vm7, %v2261_v22  ;;  %v210_v44 = vmul.u32 2, %v1479_v33  ;;  %v1481_v45 = vadd.s32 4294967232, %v130_v34  ;;  %v132_v46 = vadd.s32 120, %v2326_v2  ;;  %v2407_v47 = vpack.c.bf16 %v248_v38, %v247_v37  ;;  %vm2420_vm13 = vmpackc.low %vm238_vm11, %vm2401_vm10  ;;  %v250_v60 = vld [vmem:[%s2379_s22 + $0x18] sm:$0xff]  ;;  %v251_v8 = vld [vmem:[%s2379_s22 + $0x20] sm:$0xff]  ;;  %p2205_p3 = pnand %p2204_p2, %p2198_p13 }
  0x1c   : > { %1638 = vmatprep.subr.bf16.mxu1 %v2259_v1  ;;  %1754 = vmatprep.subr.bf16.mxu0 %v2259_v1  ;;  %vm239_vm12 = vcmp.eq.s32.totalorder %v2328_v3, %v223_v35  ;;  %v1482_v48 = vadd.s32 4294967232, %v131_v36  ;;  %v225_v50 = vadd.s32 1, %v209_v41  ;;  %v211_v51 = vmul.u32 2, %v1480_v42  ;;  %v252_v9 = vld [vmem:[%s2379_s22 + $0x28] sm:$0xff]  ;;  %v253_v13 = vld [vmem:[%s2379_s22 + $0x30] sm:$0xff]  ;;  %v254_v14 = vld [vmem:[%s2379_s22 + $0x38] sm:$0xff] }
  0x1d   : > { %v346_v52 = vunpack.c.l.bf16 %v2407_v47  ;;  %v347_v53 = vunpack.c.h.bf16 %v2407_v47  ;;  %vm240_vm14 = vcmp.eq.s32.totalorder %v2328_v3, %v224_v43  ;;  %v226_v54 = vadd.s32 1, %v210_v44  ;;  %v255_v25 = vld [vmem:[%s2379_s22 + $0x40] sm:$0xff]  ;;  %v256_v26 = vld [vmem:[%s2379_s22 + $0x48] sm:$0xff]  ;;  %v257_v34 = vld [vmem:[%s2379_s22 + $0x50] sm:$0xff] }
  0x1e   : > { %v212_v55 = vmul.u32 2, %v1481_v45  ;;  %v1483_v56 = vadd.s32 4294967232, %v132_v46  ;;  %vm2439_vm15 = vmpackc.low %vm240_vm14, %vm239_vm12  ;;  %vm241_vm1 = vcmp.eq.s32.totalorder %v2328_v3, %v225_v50  ;;  %v213_v62 = vmul.u32 2, %v1482_v48  ;;  %v258_v35 = vld [vmem:[%s2379_s22 + $0x58] sm:$0xff] }
  0x1f   : > { %1639 = vmatpush3.bf16.msk.msra.mxu1 %vm2396_vm9, %v2261_v22  ;;  %1755 = vmatpush3.bf16.msk.msra.mxu0 %vm2396_vm9, %v2261_v22  ;;  %v396_v57 = vsub.f32 %v247_v37, %v346_v52  ;;  %v397_v58 = vsub.f32 %v248_v38, %v347_v53  ;;  %vm242_vm2 = vcmp.eq.s32.totalorder %v2328_v3, %v226_v54  ;;  %v227_v0 = vadd.s32 1, %v211_v51  ;;  %v259_v54 = vld [vmem:[%s2379_s22 + $0x60] sm:$0xff]  ;;  %v266_v10 = vld [vmem:[%s2379_s22 + $0x98] sm:$0xff] }
  0x20   : > { %1640 = vmatprep.subr.bf16.mxu1 %v2259_v1  ;;  %1756 = vmatprep.subr.bf16.mxu0 %v2259_v1  ;;  %v228_v2 = vadd.s32 1, %v212_v55  ;;  %v214_v4 = vmul.u32 2, %v1483_v56  ;;  %v2449_v7 = vpack.c.bf16 %v250_v60, %v249_v59  ;;  %vm2463_vm3 = vmpackc.low %vm242_vm2, %vm241_vm1  ;;  %v229_v15 = vadd.s32 1, %v213_v62  ;;  %v260_v55 = vld [vmem:[%s2379_s22 + $0x68] sm:$0xff] }
  0x21   : > { %v2444_v63 = vpack.c.bf16 %v397_v58, %v396_v57  ;;  %vm243_vm5 = vcmp.eq.s32.totalorder %v2328_v3, %v227_v0  ;;  %v2479_v21 = vpack.c.bf16 %v252_v9, %v251_v8  ;;  %v2487_v23 = vpack.c.bf16 %v254_v14, %v253_v13 }
  0x22   : > { %vm244_vm6 = vcmp.eq.s32.totalorder %v2328_v3, %v228_v2  ;;  %v230_v16 = vadd.s32 1, %v214_v4  ;;  %v348_v18 = vunpack.c.l.bf16 %v2449_v7  ;;  %v349_v19 = vunpack.c.h.bf16 %v2449_v7 }
  0x23   : > { %1641 = vmatpush3.bf16.msk.msra.mxu1 %vm2420_vm13, %v2261_v22  ;;  %1757 = vmatpush3.bf16.msk.msra.mxu0 %vm2420_vm13, %v2261_v22  ;;  %v471_v5 = vunpack.c.l.bf16 %v2444_v63  ;;  %v472_v6 = vunpack.c.h.bf16 %v2444_v63  ;;  %vm2491_vm8 = vmpackc.low %vm244_vm6, %vm243_vm5  ;;  %vm245_vm10 = vcmp.eq.s32.totalorder %v2328_v3, %v229_v15  ;;  %v350_v30 = vunpack.c.l.bf16 %v2479_v21 }
  0x24   : > { %1642 = vmatprep.subr.bf16.mxu1 %v2259_v1  ;;  %1758 = vmatprep.subr.bf16.mxu0 %v2259_v1  ;;  %vm246_vm11 = vcmp.eq.s32.totalorder %v2328_v3, %v230_v16  ;;  %v398_v28 = vsub.f32 %v249_v59, %v348_v18  ;;  %v399_v29 = vsub.f32 %v250_v60, %v349_v19  ;;  %v351_v31 = vunpack.c.h.bf16 %v2479_v21  ;;  %v261_v18 = vld [vmem:[%s2379_s22 + $0x70] sm:$0xff]  ;;  %v262_v19 = vld [vmem:[%s2379_s22 + $0x78] sm:$0xff] }
  0x25   : > { %v2467_v11 = vsub.f32 %v396_v57, %v471_v5  ;;  %v2469_v12 = vsub.f32 %v397_v58, %v472_v6  ;;  %v352_v32 = vunpack.c.l.bf16 %v2487_v23  ;;  %v353_v33 = vunpack.c.h.bf16 %v2487_v23  ;;  %vm2517_vm12 = vmpackc.low %vm246_vm11, %vm245_vm10 }
  0x26   : > { %v2521_v37 = vpack.c.bf16 %v256_v26, %v255_v25  ;;  %v447_v38 = vpack.c.bf16 %v399_v29, %v398_v28  ;;  %v400_v40 = vsub.f32 %v251_v8, %v350_v30  ;;  %v401_v41 = vsub.f32 %v252_v9, %v351_v31 }
  0x27   : > { %1643 = vmatpush3.bf16.msk.msra.mxu1 %vm2439_vm15, %v2261_v22  ;;  %1759 = vmatpush3.bf16.msk.msra.mxu0 %vm2439_vm15, %v2261_v22  ;;  %v571_v17 = vpack.c.bf16 %v2469_v12, %v2467_v11  ;;  %v2523_v42 = vpack.c.bf16 %v258_v35, %v257_v34  ;;  %v402_v3 = vsub.f32 %v253_v13, %v352_v32 }
  0x28   : > { %1644 = vmatprep.subr.bf16.mxu1 %v2259_v1  ;;  %1760 = vmatprep.subr.bf16.mxu0 %v2259_v1  ;;  %v403_v43 = vsub.f32 %v254_v14, %v353_v33  ;;  %v354_v44 = vunpack.c.l.bf16 %v2521_v37  ;;  %v355_v45 = vunpack.c.h.bf16 %v2521_v37  ;;  %v473_v46 = vunpack.c.l.bf16 %v447_v38 }
  0x29   : > { %v474_v48 = vunpack.c.h.bf16 %v447_v38  ;;  %v2537_v50 = vpack.c.bf16 %v401_v41, %v400_v40  ;;  %v356_v51 = vunpack.c.l.bf16 %v2523_v42  ;;  %v357_v53 = vunpack.c.h.bf16 %v2523_v42 }
  0x2a   : > { %v2545_v52 = vpack.c.bf16 %v403_v43, %v402_v3  ;;  %v405_v56 = vsub.f32 %v256_v26, %v355_v45  ;;  %v2555_v57 = vsub.f32 %v398_v28, %v473_v46 }
  0x2b   : > { %1645 = vmatpush3.bf16.msk.msra.mxu1 %vm2463_vm3, %v2261_v22  ;;  %1761 = vmatpush3.bf16.msk.msra.mxu0 %vm2463_vm3, %v2261_v22  ;;  %v475_v58 = vunpack.c.l.bf16 %v2537_v50  ;;  %v2560_v59 = vsub.f32 %v399_v29, %v474_v48  ;;  %v476_v60 = vunpack.c.h.bf16 %v2537_v50  ;;  %v406_v62 = vsub.f32 %v257_v34, %v356_v51 }
  0x2c   : > { %1646 = vmatprep.subr.bf16.mxu1 %v2259_v1  ;;  %1762 = vmatprep.subr.bf16.mxu0 %v2259_v1  ;;  %v477_v20 = vunpack.c.l.bf16 %v2545_v52  ;;  %v407_v2 = vsub.f32 %v258_v35, %v357_v53  ;;  %v478_v6 = vunpack.c.h.bf16 %v2545_v52  ;;  %v2613_v29 = vpack.c.bf16 %v262_v19, %v261_v18 }
  0x2d   : > { %v2565_v0 = vsub.f32 %v400_v40, %v475_v58  ;;  %v572_v4 = vpack.c.bf16 %v2560_v59, %v2555_v57  ;;  %v2573_v5 = vsub.f32 %v401_v41, %v476_v60 }
  0x2e   : > { %v2585_v13 = vsub.f32 %v402_v3, %v477_v20  ;;  %v2587_v14 = vsub.f32 %v403_v43, %v478_v6  ;;  %v360_v41 = vunpack.c.l.bf16 %v2613_v29  ;;  %v361_v49 = vunpack.c.h.bf16 %v2613_v29  ;;  %v263_v3 = vld [vmem:[%s2379_s22 + $0x80] sm:$0xff]  ;;  %v264_v43 = vld [vmem:[%s2379_s22 + $0x88] sm:$0xff] }
  0x2f   : > { %1647 = vmatpush3.bf16.msk.msra.mxu1 %vm2491_vm8, %v2261_v22  ;;  %1763 = vmatpush3.bf16.msk.msra.mxu0 %vm2491_vm8, %v2261_v22  ;;  %v573_v9 = vpack.c.bf16 %v2573_v5, %v2565_v0  ;;  %v2656_v46 = vpack.c.bf16 %v264_v43, %v263_v3 }
  0x30   : > { %1648 = vmatprep.subr.bf16.mxu1 %v2259_v1  ;;  %1764 = vmatprep.subr.bf16.mxu0 %v2259_v1  ;;  %v574_v26 = vpack.c.bf16 %v2587_v14, %v2585_v13  ;;  %v410_v48 = vsub.f32 %v261_v18, %v360_v41  ;;  %v267_v18 = vld [vmem:[%s2379_s22 + $0xa0] sm:$0xff] }
  0x33   : > { %1649 = vmatpush3.bf16.msk.msra.mxu1 %vm2517_vm12, %v2261_v22  ;;  %1765 = vmatpush3.bf16.msk.msra.mxu0 %vm2517_vm12, %v2261_v22 }
  0x34   : > { %1866 = vmatprep.subr.bf16.mxu0 %v2259_v1  ;;  %1982 = vmatprep.subr.bf16.mxu1 %v2259_v1 }
  0x36   : > { %1651 = vmatmul.mubr.bf16.vlgmr.msra.gmra.mrb[0].mxu1 %v2444_v63  ;;  %1767 = vmatmul.mubr.bf16.vlgmr.msra.gmra.mrb[0].mxu0 %v2407_v47  ;;  %v404_v47 = vsub.f32 %v255_v25, %v354_v44  ;;  %v2563_v63 = vpack.c.bf16 %v260_v55, %v259_v54  ;;  %v2599_v25 = vpack.c.bf16 %v407_v2, %v406_v62 }
  0x37   : > { %1867 = vmatpush3.bf16.msk.msra.mxu0 %vm2352_vm4, %v2261_v22  ;;  %1654 = vmatprep.mubr.msk.bf16.mxu1 %vm2260_vm0, %v2259_v1 }
  0x38   : > { %1770 = vmatprep.mubr.msk.bf16.mxu0 %vm2260_vm0, %v2259_v1  ;;  %1990 = vmatpush3.bf16.msk.msra.mxu1 %vm2352_vm4, %v2261_v22  ;;  %v2577_v8 = vpack.c.bf16 %v405_v56, %v404_v47  ;;  %v358_v15 = vunpack.c.l.bf16 %v2563_v63  ;;  %v359_v16 = vunpack.c.h.bf16 %v2563_v63  ;;  %v481_v30 = vunpack.c.l.bf16 %v2599_v25 }
  0x39   : > { %1868 = vmatprep.subr.bf16.mxu0 %v2259_v1  ;;  %1983 = vmatprep.subr.bf16.mxu1 %v2259_v1  ;;  %v482_v39 = vunpack.c.h.bf16 %v2599_v25 }
  0x3a   : > { %v479_v27 = vunpack.c.l.bf16 %v2577_v8  ;;  %v408_v31 = vsub.f32 %v259_v54, %v358_v15  ;;  %v409_v32 = vsub.f32 %v260_v55, %v359_v16  ;;  %v2620_v34 = vsub.f32 %v406_v62, %v481_v30 }
  0x3b   : > { %1869 = vmatpush3.bf16.msk.msra.mxu0 %vm2371_vm7, %v2261_v22  ;;  %v362_v55 = vunpack.c.l.bf16 %v2656_v46 }
  0x3c   : > { %1870 = vmatprep.subr.bf16.mxu0 %v2259_v1  ;;  %1991 = vmatpush3.bf16.msk.msra.mxu1 %vm2371_vm7, %v2261_v22  ;;  %v2610_v28 = vsub.f32 %v404_v47, %v479_v27  ;;  %v2636_v40 = vpack.c.bf16 %v409_v32, %v408_v31  ;;  %v363_v47 = vunpack.c.h.bf16 %v2656_v46 }
  0x3d   : > { %1984 = vmatprep.subr.bf16.mxu1 %v2259_v1  ;;  %v412_v60 = vsub.f32 %v263_v3, %v362_v55  ;;  %v270_v3 = vld [vmem:[%s2379_s22 + $0xb8] sm:$0xff] }
  0x3e   : > { %1655 = vmatmul.mubr.bf16.gmra.mrb[4].mxu1 %v447_v38  ;;  %1771 = vmatmul.mubr.bf16.gmra.mrb[4].mxu0 %v2449_v7  ;;  %v480_v7 = vunpack.c.h.bf16 %v2577_v8  ;;  %v2632_v38 = vsub.f32 %v407_v2, %v482_v39  ;;  %v484_v45 = vunpack.c.h.bf16 %v2636_v40  ;;  %v413_v62 = vsub.f32 %v264_v43, %v363_v47 }
  0x3f   : > { %1658 = vmatprep.mubr.msk.bf16.mxu1 %vm2260_vm0, %v2259_v1  ;;  %1774 = vmatprep.mubr.msk.bf16.mxu0 %vm2260_vm0, %v2259_v1 }
  0x40   : > { %1871 = vmatpush3.bf16.msk.msra.mxu0 %vm2396_vm9, %v2261_v22  ;;  %1992 = vmatpush3.bf16.msk.msra.mxu1 %vm2396_vm9, %v2261_v22  ;;  %v2617_v33 = vsub.f32 %v405_v56, %v480_v7  ;;  %v576_v44 = vpack.c.bf16 %v2632_v38, %v2620_v34  ;;  %v2662_v53 = vsub.f32 %v409_v32, %v484_v45  ;;  %v265_v56 = vld [vmem:[%s2379_s22 + $0x90] sm:$0xff] }
  0x41   : > { %1872 = vmatprep.subr.bf16.mxu0 %v2259_v1  ;;  %1985 = vmatprep.subr.bf16.mxu1 %v2259_v1  ;;  %v2694_v58 = vpack.c.bf16 %v266_v10, %v265_v56  ;;  %v454_v6 = vpack.c.bf16 %v413_v62, %v412_v60 }
  0x42   : > { %v575_v35 = vpack.c.bf16 %v2617_v33, %v2610_v28 }
  0x43   : > { %v364_v15 = vunpack.c.l.bf16 %v2694_v58  ;;  %v365_v16 = vunpack.c.h.bf16 %v2694_v58  ;;  %v488_v36 = vunpack.c.h.bf16 %v454_v6 }
  0x44   : > { %1873 = vmatpush3.bf16.msk.msra.mxu0 %vm2420_vm13, %v2261_v22  ;;  %1993 = vmatpush3.bf16.msk.msra.mxu1 %vm2420_vm13, %v2261_v22 }
  0x45   : > { %1874 = vmatprep.subr.bf16.mxu0 %v2259_v1  ;;  %1986 = vmatprep.subr.bf16.mxu1 %v2259_v1  ;;  %v414_v27 = vsub.f32 %v265_v56, %v364_v15  ;;  %v2722_v30 = vsub.f32 %v413_v62, %v488_v36 }
  0x46   : > { %1659 = vmatmul.mubr.bf16.gmra.mrb[8].mxu1 %v2537_v50  ;;  %1775 = vmatmul.mubr.bf16.gmra.mrb[8].mxu0 %v2479_v21  ;;  %v483_v21 = vunpack.c.l.bf16 %v2636_v40  ;;  %v411_v50 = vsub.f32 %v262_v19, %v361_v49  ;;  %v268_v19 = vld [vmem:[%s2379_s22 + $0xa8] sm:$0xff]  ;;  %v269_v49 = vld [vmem:[%s2379_s22 + $0xb0] sm:$0xff] }
  0x47   : > { %1662 = vmatprep.mubr.msk.bf16.mxu1 %vm2260_vm0, %v2259_v1  ;;  %1778 = vmatprep.mubr.msk.bf16.mxu0 %vm2260_vm0, %v2259_v1  ;;  %v332_v45 = vpack.c.bf16 %v270_v3, %v269_v49 }
  0x48   : > { %1875 = vmatpush3.bf16.msk.msra.mxu0 %vm2439_vm15, %v2261_v22  ;;  %1994 = vmatpush3.bf16.msk.msra.mxu1 %vm2439_vm15, %v2261_v22  ;;  %v2660_v51 = vsub.f32 %v408_v31, %v483_v21  ;;  %v2676_v54 = vpack.c.bf16 %v411_v50, %v410_v48 }
  0x49   : > { %1876 = vmatprep.subr.bf16.mxu0 %v2259_v1  ;;  %1987 = vmatprep.subr.bf16.mxu1 %v2259_v1  ;;  %v368_v56 = vunpack.c.l.bf16 %v332_v45 }
  0x4a   : > { %v577_v61 = vpack.c.bf16 %v2662_v53, %v2660_v51 }
  0x4c   : > { %1877 = vmatpush3.bf16.msk.msra.mxu0 %vm2463_vm3, %v2261_v22  ;;  %1995 = vmatpush3.bf16.msk.msra.mxu1 %vm2463_vm3, %v2261_v22 }
  0x4d   : > { %1878 = vmatprep.subr.bf16.mxu0 %v2259_v1  ;;  %1988 = vmatprep.subr.bf16.mxu1 %v2259_v1 }
  0x4e   : > { %1663 = vmatmul.mubr.bf16.gmra.mrb[12].mxu1 %v2545_v52  ;;  %1779 = vmatmul.mubr.bf16.gmra.mrb[12].mxu0 %v2487_v23  ;;  %v485_v23 = vunpack.c.l.bf16 %v2676_v54  ;;  %v486_v52 = vunpack.c.h.bf16 %v2676_v54 }
  0x4f   : > { %1666 = vmatprep.mubr.msk.bf16.mxu1 %vm2260_vm0, %v2259_v1  ;;  %1782 = vmatprep.mubr.msk.bf16.mxu0 %vm2260_vm0, %v2259_v1 }
  0x50   : > { %1879 = vmatpush3.bf16.msk.msra.mxu0 %vm2491_vm8, %v2261_v22  ;;  %1996 = vmatpush3.bf16.msk.msra.mxu1 %vm2491_vm8, %v2261_v22  ;;  %v2698_v20 = vsub.f32 %v410_v48, %v485_v23  ;;  %v2700_v2 = vsub.f32 %v411_v50, %v486_v52 }
  0x51   : > { %1880 = vmatprep.subr.bf16.mxu0 %v2259_v1  ;;  %1989 = vmatprep.subr.bf16.mxu1 %v2259_v1 }
  0x52   : > { %v578_v24 = vpack.c.bf16 %v2700_v2, %v2698_v20 }
  0x54   : > { %1881 = vmatpush3.bf16.msk.msra.mxu0 %vm2517_vm12, %v2261_v22  ;;  %1997 = vmatpush3.bf16.msk.msra.mxu1 %vm2517_vm12, %v2261_v22  ;;  %v487_v22 = vunpack.c.l.bf16 %v454_v6 }
  0x56   : > { %1667 = vmatmul.mubr.bf16.gmra.mrb[16].mxu1 %v2577_v8  ;;  %1783 = vmatmul.mubr.bf16.gmra.mrb[16].mxu0 %v2521_v37  ;;  %v331_v8 = vpack.c.bf16 %v268_v19, %v267_v18  ;;  %v415_v37 = vsub.f32 %v266_v10, %v365_v16  ;;  %v2720_v7 = vsub.f32 %v412_v60, %v487_v22  ;;  %v369_v10 = vunpack.c.h.bf16 %v332_v45 }
  0x57   : > { %1670 = vmatprep.mubr.msk.bf16.mxu1 %vm2260_vm0, %v2259_v1  ;;  %1786 = vmatprep.mubr.msk.bf16.mxu0 %vm2260_vm0, %v2259_v1  ;;  %v418_v60 = vsub.f32 %v269_v49, %v368_v56 }
  0x58   : > { %v579_v31 = vpack.c.bf16 %v2722_v30, %v2720_v7  ;;  %v455_v32 = vpack.c.bf16 %v415_v37, %v414_v27  ;;  %v366_v39 = vunpack.c.l.bf16 %v331_v8  ;;  %v367_v41 = vunpack.c.h.bf16 %v331_v8  ;;  %v295_v30 = vld [vmem:[%s2379_s22 + $0x180] sm:$0xff] }
  0x59   : > { %v419_v62 = vsub.f32 %v270_v3, %v369_v10 }
  0x5a   : > { %v489_v43 = vunpack.c.l.bf16 %v455_v32  ;;  %v490_v21 = vunpack.c.h.bf16 %v455_v32  ;;  %v416_v48 = vsub.f32 %v267_v18, %v366_v39  ;;  %v417_v50 = vsub.f32 %v268_v19, %v367_v41 }
  0x5c   : > { %v2734_v55 = vsub.f32 %v414_v27, %v489_v43  ;;  %v456_v47 = vpack.c.bf16 %v417_v50, %v416_v48 }
  0x5e   : > { %1671 = vmatmul.mubr.bf16.gmra.mrb[20].mxu1 %v2599_v25  ;;  %1787 = vmatmul.mubr.bf16.gmra.mrb[20].mxu0 %v2523_v42  ;;  %v2736_v25 = vsub.f32 %v415_v37, %v490_v21  ;;  %v491_v23 = vunpack.c.l.bf16 %v456_v47  ;;  %v492_v52 = vunpack.c.h.bf16 %v456_v47  ;;  %v273_v37 = vld [vmem:[%s2379_s22 + $0xd0] sm:$0xff]  ;;  %v275_v21 = vld [vmem:[%s2379_s22 + $0xe0] sm:$0xff] }
  0x5f   : > { %1674 = vmatprep.mubr.msk.bf16.mxu1 %vm2260_vm0, %v2259_v1  ;;  %1790 = vmatprep.mubr.msk.bf16.mxu0 %vm2260_vm0, %v2259_v1 }
  0x60   : > { %v580_v42 = vpack.c.bf16 %v2736_v25, %v2734_v55  ;;  %v2746_v15 = vsub.f32 %v416_v48, %v491_v23  ;;  %v2748_v16 = vsub.f32 %v417_v50, %v492_v52  ;;  %v277_v52 = vld [vmem:[%s2379_s22 + $0xf0] sm:$0xff] }
  0x66   : > { %1675 = vmatmul.mubr.bf16.gmra.mrb[24].mxu1 %v2636_v40  ;;  %1791 = vmatmul.mubr.bf16.gmra.mrb[24].mxu0 %v2563_v63  ;;  %v581_v63 = vpack.c.bf16 %v2748_v16, %v2746_v15  ;;  %v457_v40 = vpack.c.bf16 %v419_v62, %v418_v60 }
  0x67   : > { %1678 = vmatprep.mubr.msk.bf16.mxu1 %vm2260_vm0, %v2259_v1  ;;  %1794 = vmatprep.mubr.msk.bf16.mxu0 %vm2260_vm0, %v2259_v1 }
  0x68   : > { %v493_v18 = vunpack.c.l.bf16 %v457_v40  ;;  %v494_v19 = vunpack.c.h.bf16 %v457_v40 }
  0x6a   : > { %v2758_v22 = vsub.f32 %v418_v60, %v493_v18  ;;  %v2760_v36 = vsub.f32 %v419_v62, %v494_v19  ;;  %v278_v60 = vld [vmem:[%s2379_s22 + $0xf8] sm:$0xff] }
  0x6b   : > { %v2827_v18 = vpack.c.bf16 %v278_v60, %v277_v52 }
  0x6c   : > { %v3380_v15 = vpack.c.bf16 %v2760_v36, %v2758_v22 }
  0x6d   : > { %v376_v11 = vunpack.c.l.bf16 %v2827_v18  ;;  %v377_v12 = vunpack.c.h.bf16 %v2827_v18 }
  0x6e   : > { %1679 = vmatmul.mubr.bf16.gmra.mrb[28].mxu1 %v2676_v54  ;;  %1795 = vmatmul.mubr.bf16.gmra.mrb[28].mxu0 %v2613_v29  ;;  %v271_v29 = vld [vmem:[%s2379_s22 + $0xc0] sm:$0xff] }
  0x6f   : > { %1682 = vmatprep.mubr.msk.bf16.mxu1 %vm2260_vm0, %v2259_v1  ;;  %1798 = vmatprep.mubr.msk.bf16.mxu0 %vm2260_vm0, %v2259_v1 }
  0x76   : > { %1683 = vmatmul.mubr.bf16.gmra.mrb[32].mxu1 %v454_v6  ;;  %1799 = vmatmul.mubr.bf16.gmra.mrb[32].mxu0 %v2656_v46  ;;  %v272_v6 = vld [vmem:[%s2379_s22 + $0xc8] sm:$0xff] }
  0x77   : > { %1686 = vmatprep.mubr.msk.bf16.mxu1 %vm2260_vm0, %v2259_v1  ;;  %1802 = vmatprep.mubr.msk.bf16.mxu0 %vm2260_vm0, %v2259_v1  ;;  %v333_v46 = vpack.c.bf16 %v272_v6, %v271_v29 }
  0x79   : > { %v371_v27 = vunpack.c.h.bf16 %v333_v46 }
  0x7b   : > { %v2784_v41 = vsub.f32 %v272_v6, %v371_v27  ;;  %v2845_v6 = vsub.f32 %v277_v52, %v376_v11  ;;  %v286_v11 = vld [vmem:[%s2379_s22 + $0x138] sm:$0xff] }
  0x7e   : > { %1687 = vmatmul.mubr.bf16.gmra.mrb[36].mxu1 %v455_v32  ;;  %1803 = vmatmul.mubr.bf16.gmra.mrb[36].mxu0 %v2694_v58  ;;  %v370_v58 = vunpack.c.l.bf16 %v333_v46  ;;  %v274_v32 = vld [vmem:[%s2379_s22 + $0xd8] sm:$0xff] }
  0x7f   : > { %1690 = vmatprep.mubr.msk.bf16.mxu1 %vm2260_vm0, %v2259_v1  ;;  %1806 = vmatprep.mubr.msk.bf16.mxu0 %vm2260_vm0, %v2259_v1 }
  0x80   : > { %v2782_v39 = vsub.f32 %v271_v29, %v370_v58  ;;  %v280_v29 = vld [vmem:[%s2379_s22 + $0x108] sm:$0xff] }
  0x82   : > { %v2794_v49 = vpack.c.bf16 %v2784_v41, %v2782_v39 }
  0x86   : > { %1691 = vmatmul.mubr.bf16.gmra.mrb[40].mxu1 %v456_v47  ;;  %1807 = vmatmul.mubr.bf16.gmra.mrb[40].mxu0 %v331_v8  ;;  %v2786_v8 = vpack.c.bf16 %v274_v32, %v273_v37 }
  0x87   : > { %1694 = vmatprep.mubr.msk.bf16.mxu1 %vm2260_vm0, %v2259_v1  ;;  %1810 = vmatprep.mubr.msk.bf16.mxu0 %vm2260_vm0, %v2259_v1 }
  0x88   : > { %v372_v3 = vunpack.c.l.bf16 %v2786_v8  ;;  %v373_v43 = vunpack.c.h.bf16 %v2786_v8 }
  0x8a   : > { %v2801_v48 = vsub.f32 %v273_v37, %v372_v3  ;;  %v2803_v50 = vsub.f32 %v274_v32, %v373_v43  ;;  %v282_v37 = vld [vmem:[%s2379_s22 + $0x118] sm:$0xff] }
  0x8c   : > { %v2813_v56 = vpack.c.bf16 %v2803_v50, %v2801_v48 }
  0x8e   : > { %1695 = vmatmul.mubr.bf16.gmra.mrb[44].mxu1 %v457_v40  ;;  %1811 = vmatmul.mubr.bf16.gmra.mrb[44].mxu0 %v332_v45  ;;  %v276_v45 = vld [vmem:[%s2379_s22 + $0xe8] sm:$0xff] }
  0x8f   : > { %1698 = vmatprep.mubr.msk.bf16.mxu1 %vm2260_vm0, %v2259_v1  ;;  %1814 = vmatprep.mubr.msk.bf16.mxu0 %vm2260_vm0, %v2259_v1  ;;  %v2805_v47 = vpack.c.bf16 %v276_v45, %v275_v21 }
  0x91   : > { %v374_v10 = vunpack.c.l.bf16 %v2805_v47  ;;  %v375_v23 = vunpack.c.h.bf16 %v2805_v47 }
  0x93   : > { %v2823_v62 = vsub.f32 %v275_v21, %v374_v10  ;;  %v2825_v40 = vsub.f32 %v276_v45, %v375_v23  ;;  %v284_v45 = vld [vmem:[%s2379_s22 + $0x128] sm:$0xff] }
  0x95   : > { %v2835_v19 = vpack.c.bf16 %v2825_v40, %v2823_v62 }
  0x96   : > { %1699 = vmatmul.mubr.bf16.gmra.mrb[48].mxu1 %v2794_v49  ;;  %1815 = vmatmul.mubr.bf16.gmra.mrb[48].mxu0 %v333_v46  ;;  %v2847_v46 = vsub.f32 %v278_v60, %v377_v12 }
  0x97   : > { %1702 = vmatprep.mubr.msk.bf16.mxu1 %vm2260_vm0, %v2259_v1  ;;  %1882 = vmatprep.mubr.msk.bf16.mxu0 %vm2260_vm0, %v2259_v1 }
  0x98   : > { %v2857_v27 = vpack.c.bf16 %v2847_v46, %v2845_v6 }
  0x9e   : > { %1703 = vmatmul.mubr.bf16.gmra.mrb[52].mxu1 %v2813_v56  ;;  %1883 = vmatmul.mubr.bf16.vlgmr.msra.gmra.mrb[0].mxu0 %v571_v17  ;;  %v279_v17 = vld [vmem:[%s2379_s22 + $0x100] sm:$0xff] }
  0x9f   : > { %1706 = vmatprep.mubr.msk.bf16.mxu1 %vm2260_vm0, %v2259_v1  ;;  %1886 = vmatprep.mubr.msk.bf16.mxu0 %vm2260_vm0, %v2259_v1  ;;  %v2849_v58 = vpack.c.bf16 %v280_v29, %v279_v17 }
  0xa1   : > { %v378_v57 = vunpack.c.l.bf16 %v2849_v58  ;;  %v379_v59 = vunpack.c.h.bf16 %v2849_v58 }
  0xa3   : > { %v2867_v32 = vsub.f32 %v279_v17, %v378_v57  ;;  %v2869_v3 = vsub.f32 %v280_v29, %v379_v59  ;;  %v288_v59 = vld [vmem:[%s2379_s22 + $0x148] sm:$0xff] }
  0xa5   : > { %v2879_v21 = vpack.c.bf16 %v2869_v3, %v2867_v32 }
  0xa6   : > { %1707 = vmatmul.mubr.bf16.gmra.mrb[56].mxu1 %v2835_v19  ;;  %1887 = vmatmul.mubr.bf16.gmra.mrb[4].mxu0 %v572_v4  ;;  %v281_v4 = vld [vmem:[%s2379_s22 + $0x110] sm:$0xff] }
  0xa7   : > { %1710 = vmatprep.mubr.msk.bf16.mxu1 %vm2260_vm0, %v2259_v1  ;;  %1890 = vmatprep.mubr.msk.bf16.mxu0 %vm2260_vm0, %v2259_v1  ;;  %v2871_v43 = vpack.c.bf16 %v282_v37, %v281_v4 }
  0xa9   : > { %v380_v0 = vunpack.c.l.bf16 %v2871_v43  ;;  %v381_v5 = vunpack.c.h.bf16 %v2871_v43 }
  0xab   : > { %v2889_v10 = vsub.f32 %v281_v4, %v380_v0  ;;  %v2891_v23 = vsub.f32 %v282_v37, %v381_v5 }
  0xad   : > { %v2901_v60 = vpack.c.bf16 %v2891_v23, %v2889_v10 }
  0xae   : > { %1711 = vmatmul.mubr.bf16.gmra.mrb[60].mxu1 %v2857_v27  ;;  %1891 = vmatmul.mubr.bf16.gmra.mrb[8].mxu0 %v573_v9  ;;  %v283_v9 = vld [vmem:[%s2379_s22 + $0x120] sm:$0xff] }
  0xaf   : > { %1714 = vmatprep.mubr.msk.bf16.mxu1 %vm2260_vm0, %v2259_v1  ;;  %1894 = vmatprep.mubr.msk.bf16.mxu0 %vm2260_vm0, %v2259_v1  ;;  %v2893_v52 = vpack.c.bf16 %v284_v45, %v283_v9 }
  0xb1   : > { %v382_v13 = vunpack.c.l.bf16 %v2893_v52  ;;  %v383_v14 = vunpack.c.h.bf16 %v2893_v52 }
  0xb3   : > { %v2911_v12 = vsub.f32 %v283_v9, %v382_v13  ;;  %v2913_v17 = vsub.f32 %v284_v45, %v383_v14  ;;  %v290_v9 = vld [vmem:[%s2379_s22 + $0x158] sm:$0xff] }
  0xb5   : > { %v2923_v57 = vpack.c.bf16 %v2913_v17, %v2911_v12 }
  0xb6   : > { %1715 = vmatmul.mubr.bf16.gmra.mrb[64].mxu1 %v2879_v21  ;;  %1895 = vmatmul.mubr.bf16.gmra.mrb[12].mxu0 %v574_v26  ;;  %v285_v26 = vld [vmem:[%s2379_s22 + $0x130] sm:$0xff] }
  0xb7   : > { %1718 = vmatprep.mubr.msk.bf16.mxu1 %vm2260_vm0, %v2259_v1  ;;  %1898 = vmatprep.mubr.msk.bf16.mxu0 %vm2260_vm0, %v2259_v1  ;;  %v2915_v29 = vpack.c.bf16 %v286_v11, %v285_v26 }
  0xb9   : > { %v384_v28 = vunpack.c.l.bf16 %v2915_v29  ;;  %v385_v33 = vunpack.c.h.bf16 %v2915_v29 }
  0xbb   : > { %v2933_v4 = vsub.f32 %v285_v26, %v384_v28  ;;  %v2935_v37 = vsub.f32 %v286_v11, %v385_v33  ;;  %v292_v11 = vld [vmem:[%s2379_s22 + $0x168] sm:$0xff] }
  0xbd   : > { %v2945_v5 = vpack.c.bf16 %v2935_v37, %v2933_v4 }
  0xbe   : > { %1719 = vmatmul.mubr.bf16.gmra.mrb[68].mxu1 %v2901_v60  ;;  %1899 = vmatmul.mubr.bf16.gmra.mrb[16].mxu0 %v575_v35  ;;  %v287_v35 = vld [vmem:[%s2379_s22 + $0x140] sm:$0xff] }
  0xbf   : > { %1722 = vmatprep.mubr.msk.bf16.mxu1 %vm2260_vm0, %v2259_v1  ;;  %1902 = vmatprep.mubr.msk.bf16.mxu0 %vm2260_vm0, %v2259_v1  ;;  %v2937_v0 = vpack.c.bf16 %v288_v59, %v287_v35 }
  0xc1   : > { %v386_v34 = vunpack.c.l.bf16 %v2937_v0  ;;  %v387_v38 = vunpack.c.h.bf16 %v2937_v0 }
  0xc3   : > { %v2955_v45 = vsub.f32 %v287_v35, %v386_v34  ;;  %v2957_v13 = vsub.f32 %v288_v59, %v387_v38  ;;  %v294_v34 = vld [vmem:[%s2379_s22 + $0x178] sm:$0xff] }
  0xc5   : > { %v2967_v26 = vpack.c.bf16 %v2957_v13, %v2955_v45 }
  0xc6   : > { %1723 = vmatmul.mubr.bf16.gmra.mrb[72].mxu1 %v2923_v57  ;;  %1903 = vmatmul.mubr.bf16.gmra.mrb[20].mxu0 %v576_v44  ;;  %v289_v44 = vld [vmem:[%s2379_s22 + $0x150] sm:$0xff] }
  0xc7   : > { %1726 = vmatprep.mubr.msk.bf16.mxu1 %vm2260_vm0, %v2259_v1  ;;  %1906 = vmatprep.mubr.msk.bf16.mxu0 %vm2260_vm0, %v2259_v1  ;;  %v2959_v14 = vpack.c.bf16 %v290_v9, %v289_v44 }
  0xc9   : > { %v388_v51 = vunpack.c.l.bf16 %v2959_v14  ;;  %v389_v53 = vunpack.c.h.bf16 %v2959_v14 }
  0xcb   : > { %v2977_v28 = vsub.f32 %v289_v44, %v388_v51  ;;  %v2979_v33 = vsub.f32 %v290_v9, %v389_v53 }
  0xcd   : > { %v2989_v59 = vpack.c.bf16 %v2979_v33, %v2977_v28 }
  0xce   : > { %1727 = vmatmul.mubr.bf16.gmra.mrb[76].mxu1 %v2945_v5  ;;  %1907 = vmatmul.mubr.bf16.gmra.mrb[24].mxu0 %v577_v61  ;;  %v291_v61 = vld [vmem:[%s2379_s22 + $0x160] sm:$0xff] }
  0xcf   : > { %1730 = vmatprep.mubr.msk.bf16.mxu1 %vm2260_vm0, %v2259_v1  ;;  %1910 = vmatprep.mubr.msk.bf16.mxu0 %vm2260_vm0, %v2259_v1  ;;  %v2981_v35 = vpack.c.bf16 %v292_v11, %v291_v61 }
  0xd1   : > { %v390_v20 = vunpack.c.l.bf16 %v2981_v35  ;;  %v391_v2 = vunpack.c.h.bf16 %v2981_v35 }
  0xd3   : > { %v2999_v38 = vsub.f32 %v291_v61, %v390_v20  ;;  %v3001_v44 = vsub.f32 %v292_v11, %v391_v2 }
  0xd5   : > { %v3011_v51 = vpack.c.bf16 %v3001_v44, %v2999_v38 }
  0xd6   : > { %1731 = vmatmul.mubr.bf16.gmra.mrb[80].mxu1 %v2967_v26  ;;  %1911 = vmatmul.mubr.bf16.gmra.mrb[28].mxu0 %v578_v24  ;;  %v293_v24 = vld [vmem:[%s2379_s22 + $0x170] sm:$0xff] }
  0xd7   : > { %1734 = vmatprep.mubr.msk.bf16.mxu1 %vm2260_vm0, %v2259_v1  ;;  %1914 = vmatprep.mubr.msk.bf16.mxu0 %vm2260_vm0, %v2259_v1  ;;  %v3003_v9 = vpack.c.bf16 %v294_v34, %v293_v24 }
  0xd9   : > { %v392_v53 = vunpack.c.l.bf16 %v3003_v9  ;;  %v393_v7 = vunpack.c.h.bf16 %v3003_v9 }
  0xdb   : > { %v3021_v61 = vsub.f32 %v293_v24, %v392_v53  ;;  %v3023_v11 = vsub.f32 %v294_v34, %v393_v7  ;;  %v495_v34 = vunpack.c.l.bf16 %v2794_v49  ;;  %v496_v53 = vunpack.c.h.bf16 %v2794_v49 }
  0xdc   : > { %v497_v7 = vunpack.c.l.bf16 %v2813_v56  ;;  %v498_v49 = vunpack.c.h.bf16 %v2813_v56 }
  0xdd   : > { %v3033_v2 = vpack.c.bf16 %v3023_v11, %v3021_v61  ;;  %v545_v16 = vsub.f32 %v2782_v39, %v495_v34 }
  0xde   : > { %1735 = vmatmul.mubr.bf16.gmra.mrb[84].mxu1 %v2989_v59  ;;  %1915 = vmatmul.mubr.bf16.gmra.mrb[32].mxu0 %v579_v31  ;;  %v296_v31 = vld [vmem:[%s2379_s22 + $0x188] sm:$0xff]  ;;  %v547_v22 = vsub.f32 %v2801_v48, %v497_v7  ;;  %v548_v36 = vsub.f32 %v2803_v50, %v498_v49 }
  0xdf   : > { %1738 = vmatprep.mubr.msk.bf16.mxu1 %vm2260_vm0, %v2259_v1  ;;  %1918 = vmatprep.mubr.msk.bf16.mxu0 %vm2260_vm0, %v2259_v1  ;;  %v3025_v20 = vpack.c.bf16 %v296_v31, %v295_v30 }
  0xe0   : > { %v584_v39 = vpack.c.bf16 %v548_v36, %v547_v22  ;;  %v505_v22 = vunpack.c.l.bf16 %v2901_v60  ;;  %v506_v36 = vunpack.c.h.bf16 %v2901_v60 }
  0xe1   : > { %v394_v54 = vunpack.c.l.bf16 %v3025_v20  ;;  %v395_v55 = vunpack.c.h.bf16 %v3025_v20 }
  0xe3   : > { %v3041_v25 = vsub.f32 %v295_v30, %v394_v54  ;;  %v500_v30 = vunpack.c.h.bf16 %v2835_v19 }
  0xe5   : > { %v550_v48 = vsub.f32 %v2825_v40, %v500_v30 }
  0xe6   : > { %1739 = vmatmul.mubr.bf16.gmra.mrb[88].mxu1 %v3011_v51  ;;  %1919 = vmatmul.mubr.bf16.gmra.mrb[36].mxu0 %v580_v42  ;;  %v3043_v42 = vsub.f32 %v296_v31, %v395_v55  ;;  %v501_v55 = vunpack.c.l.bf16 %v2857_v27 }
  0xe7   : > { %1742 = vmatprep.mubr.msk.bf16.mxu1 %vm2260_vm0, %v2259_v1  ;;  %1922 = vmatprep.mubr.msk.bf16.mxu0 %vm2260_vm0, %v2259_v1 }
  0xe8   : > { %v3051_v24 = vpack.c.bf16 %v3043_v42, %v3041_v25 }
  0xee   : > { %1743 = vmatmul.mubr.bf16.gmra.mrb[92].mxu1 %v3033_v2  ;;  %1923 = vmatmul.mubr.bf16.gmra.mrb[40].mxu0 %v581_v63  ;;  %v546_v63 = vsub.f32 %v2784_v41, %v496_v53  ;;  %v499_v41 = vunpack.c.l.bf16 %v2835_v19  ;;  %v502_v19 = vunpack.c.h.bf16 %v2857_v27 }
  0xef   : > { %1746 = vmatprep.mubr.msk.bf16.mxu1 %vm2260_vm0, %v2259_v1  ;;  %1926 = vmatprep.mubr.msk.bf16.mxu0 %vm2260_vm0, %v2259_v1 }
  0xf0   : > { %v583_v54 = vpack.c.bf16 %v546_v63, %v545_v16  ;;  %v552_v40 = vsub.f32 %v2847_v46, %v502_v19  ;;  %v503_v16 = vunpack.c.l.bf16 %v2879_v21  ;;  %v504_v63 = vunpack.c.h.bf16 %v2879_v21 }
  0xf1   : > { %v509_v19 = vunpack.c.l.bf16 %v2945_v5 }
  0xf2   : > { %v554_v46 = vsub.f32 %v2869_v3, %v504_v63  ;;  %v556_v3 = vsub.f32 %v2891_v23, %v506_v36 }
  0xf6   : > { %1747 = vmatmul.mubr.bf16.gmra.mrb[96].mxu1 %v3051_v24  ;;  %1927 = vmatmul.mubr.bf16.gmra.mrb[44].mxu0 %v3380_v15 }
  0xf7   : > { %1818 = vmatprep.mubr.msk.bf16.mxu1 %vm2260_vm0, %v2259_v1  ;;  %1930 = vmatprep.mubr.msk.bf16.mxu0 %vm2260_vm0, %v2259_v1 }
  0xfe   : > { %1819 = vmatmul.mubr.bf16.vlgmr.msra.gmra.mrb[52].mxu1 %v2786_v8  ;;  %1931 = vmatmul.mubr.bf16.gmra.mrb[48].mxu0 %v583_v54  ;;  %v549_v8 = vsub.f32 %v2823_v62, %v499_v41  ;;  %v551_v62 = vsub.f32 %v2845_v6, %v501_v55  ;;  %v553_v6 = vsub.f32 %v2867_v32, %v503_v16  ;;  %v512_v16 = vunpack.c.h.bf16 %v2967_v26 }
  0xff   : > { %1822 = vmatprep.mubr.msk.bf16.mxu1 %vm2260_vm0, %v2259_v1  ;;  %1934 = vmatprep.mubr.msk.bf16.mxu0 %vm2260_vm0, %v2259_v1  ;;  %v555_v32 = vsub.f32 %v2889_v10, %v505_v22 }
 0x100   : > { %v585_v56 = vpack.c.bf16 %v550_v48, %v549_v8  ;;  %v586_v15 = vpack.c.bf16 %v552_v40, %v551_v62  ;;  %v587_v49 = vpack.c.bf16 %v554_v46, %v553_v6  ;;  %v507_v8 = vunpack.c.l.bf16 %v2923_v57 }
 0x101   : > { %v588_v30 = vpack.c.bf16 %v556_v3, %v555_v32  ;;  %v508_v48 = vunpack.c.h.bf16 %v2923_v57  ;;  %v513_v46 = vunpack.c.l.bf16 %v2989_v59  ;;  %v516_v32 = vunpack.c.h.bf16 %v3011_v51 }
 0x102   : > { %v557_v10 = vsub.f32 %v2911_v12, %v507_v8  ;;  %v559_v12 = vsub.f32 %v2933_v4, %v509_v19  ;;  %v517_v8 = vunpack.c.l.bf16 %v3033_v2 }
 0x103   : > { %v558_v23 = vsub.f32 %v2913_v17, %v508_v48  ;;  %v518_v48 = vunpack.c.h.bf16 %v3033_v2 }
 0x105   : > { %v589_v55 = vpack.c.bf16 %v558_v23, %v557_v10 }
 0x106   : > { %1823 = vmatmul.mubr.bf16.gmra.mrb[56].mxu1 %v2805_v47  ;;  %1935 = vmatmul.mubr.bf16.gmra.mrb[52].mxu0 %v584_v39 }
 0x107   : > { %1826 = vmatprep.mubr.msk.bf16.mxu1 %vm2260_vm0, %v2259_v1  ;;  %1938 = vmatprep.mubr.msk.bf16.mxu0 %vm2260_vm0, %v2259_v1 }
 0x109   : > { %v3083_v50 = vpop.f32.mrb[0].mxu1 }
 0x10a   : > { %v1652_v31 = vpop.f32.mrb[1].mxu1 }
 0x10b   : > { %v3087_v47 = vpop.f32.mrb[2].mxu1 }
 0x10c   : > { %v1653_v34 = vpop.f32.mrb[3].mxu1 }
 0x10d   : > { %v510_v34 = vunpack.c.h.bf16 %v2945_v5 }
 0x10e   : > { %1827 = vmatmul.mubr.bf16.gmra.mrb[60].mxu1 %v2827_v18  ;;  %1939 = vmatmul.mubr.bf16.gmra.mrb[56].mxu0 %v585_v56 }
 0x10f   : > { %1830 = vmatprep.mubr.msk.bf16.mxu1 %vm2260_vm0, %v2259_v1  ;;  %1942 = vmatprep.mubr.msk.bf16.mxu0 %vm2260_vm0, %v2259_v1  ;;  %v560_v17 = vsub.f32 %v2935_v37, %v510_v34  ;;  %v562_v37 = vsub.f32 %v2957_v13, %v512_v16 }
 0x111   : > { %v3096_v53 = vpop.f32.mrb[4].mxu1 }
 0x112   : > { %v1656_v27 = vpop.f32.mrb[5].mxu1 }
 0x113   : > { %v3100_v18 = vpop.f32.mrb[6].mxu1  ;;  %v511_v27 = vunpack.c.l.bf16 %v2967_v26 }
 0x114   : > { %v1657_v54 = vpop.f32.mrb[7].mxu1 }
 0x115   : > { %v561_v4 = vsub.f32 %v2955_v45, %v511_v27  ;;  %v563_v45 = vsub.f32 %v2977_v28, %v513_v46 }
 0x116   : > { %1831 = vmatmul.mubr.bf16.gmra.mrb[64].mxu1 %v2849_v58  ;;  %1943 = vmatmul.mubr.bf16.gmra.mrb[60].mxu0 %v586_v15  ;;  %v590_v15 = vpack.c.bf16 %v560_v17, %v559_v12 }
 0x117   : > { %1834 = vmatprep.mubr.msk.bf16.mxu1 %vm2260_vm0, %v2259_v1  ;;  %1946 = vmatprep.mubr.msk.bf16.mxu0 %vm2260_vm0, %v2259_v1  ;;  %v591_v6 = vpack.c.bf16 %v562_v37, %v561_v4 }
 0x119   : > { %v3109_v7 = vpop.f32.mrb[8].mxu1 }
 0x11a   : > { %v1660_v21 = vpop.f32.mrb[9].mxu1 }
 0x11b   : > { %v3113_v58 = vpop.f32.mrb[10].mxu1 }
 0x11c   : > { %v1661_v39 = vpop.f32.mrb[11].mxu1 }
 0x11d   : > { %v515_v39 = vunpack.c.l.bf16 %v3011_v51 }
 0x11e   : > { %1835 = vmatmul.mubr.bf16.gmra.mrb[68].mxu1 %v2871_v43  ;;  %1947 = vmatmul.mubr.bf16.gmra.mrb[64].mxu0 %v587_v49  ;;  %v514_v49 = vunpack.c.h.bf16 %v2989_v59 }
 0x11f   : > { %1838 = vmatprep.mubr.msk.bf16.mxu1 %vm2260_vm0, %v2259_v1  ;;  %1950 = vmatprep.mubr.msk.bf16.mxu0 %vm2260_vm0, %v2259_v1  ;;  %v565_v28 = vsub.f32 %v2999_v38, %v515_v39  ;;  %v567_v38 = vsub.f32 %v3021_v61, %v517_v8 }
 0x120   : > { %v564_v13 = vsub.f32 %v2979_v33, %v514_v49  ;;  %v566_v33 = vsub.f32 %v3001_v44, %v516_v32  ;;  %v568_v44 = vsub.f32 %v3023_v11, %v518_v48 }
 0x121   : > { %v3122_v41 = vpop.f32.mrb[12].mxu1 }
 0x122   : > { %v1664_v60 = vpop.f32.mrb[13].mxu1  ;;  %v592_v36 = vpack.c.bf16 %v564_v13, %v563_v45  ;;  %v594_v23 = vpack.c.bf16 %v568_v44, %v567_v38 }
 0x123   : > { %v3126_v43 = vpop.f32.mrb[14].mxu1  ;;  %v593_v60 = vpack.c.bf16 %v566_v33, %v565_v28 }
 0x124   : > { %v1665_v56 = vpop.f32.mrb[15].mxu1 }
 0x126   : > { %1839 = vmatmul.mubr.bf16.gmra.mrb[72].mxu1 %v2893_v52  ;;  %1951 = vmatmul.mubr.bf16.gmra.mrb[68].mxu0 %v588_v30 }
 0x127   : > { %1842 = vmatprep.mubr.msk.bf16.mxu1 %vm2260_vm0, %v2259_v1  ;;  %1954 = vmatprep.mubr.msk.bf16.mxu0 %vm2260_vm0, %v2259_v1 }
 0x129   : > { %v3135_v31 = vpop.f32.mrb[16].mxu1 }
 0x12a   : > { %v1668_v57 = vpop.f32.mrb[17].mxu1 }
 0x12b   : > { %v3139_v52 = vpop.f32.mrb[18].mxu1  ;;  %v520_v57 = vunpack.c.h.bf16 %v3051_v24 }
 0x12c   : > { %v1669_v62 = vpop.f32.mrb[19].mxu1 }
 0x12d   : > { %v570_v11 = vsub.f32 %v3043_v42, %v520_v57 }
 0x12e   : > { %1843 = vmatmul.mubr.bf16.gmra.mrb[76].mxu1 %v2915_v29  ;;  %1955 = vmatmul.mubr.bf16.gmra.mrb[72].mxu0 %v589_v55  ;;  %v519_v55 = vunpack.c.l.bf16 %v3051_v24 }
 0x12f   : > { %1846 = vmatprep.mubr.msk.bf16.mxu1 %vm2260_vm0, %v2259_v1  ;;  %1958 = vmatprep.mubr.msk.bf16.mxu0 %vm2260_vm0, %v2259_v1 }
 0x130   : > { %v569_v61 = vsub.f32 %v3041_v25, %v519_v55 }
 0x131   : > { %v3148_v40 = vpop.f32.mrb[20].mxu1 }
 0x132   : > { %v1672_v5 = vpop.f32.mrb[21].mxu1  ;;  %v595_v62 = vpack.c.bf16 %v570_v11, %v569_v61 }
 0x133   : > { %v3152_v29 = vpop.f32.mrb[22].mxu1 }
 0x134   : > { %v1673_v63 = vpop.f32.mrb[23].mxu1 }
 0x136   : > { %1847 = vmatmul.mubr.bf16.gmra.mrb[80].mxu1 %v2937_v0  ;;  %1959 = vmatmul.mubr.bf16.gmra.mrb[76].mxu0 %v590_v15 }
 0x137   : > { %1850 = vmatprep.mubr.msk.bf16.mxu1 %vm2260_vm0, %v2259_v1  ;;  %1962 = vmatprep.mubr.msk.bf16.mxu0 %vm2260_vm0, %v2259_v1 }
 0x139   : > { %v3161_v54 = vpop.f32.mrb[24].mxu1 }
 0x13a   : > { %v1676_v26 = vpop.f32.mrb[25].mxu1 }
 0x13b   : > { %v3165_v0 = vpop.f32.mrb[26].mxu1 }
 0x13c   : > { %v1677_v21 = vpop.f32.mrb[27].mxu1 }
 0x13e   : > { %1851 = vmatmul.mubr.bf16.gmra.mrb[84].mxu1 %v2959_v14  ;;  %1963 = vmatmul.mubr.bf16.gmra.mrb[80].mxu0 %v591_v6 }
 0x13f   : > { %1854 = vmatprep.mubr.msk.bf16.mxu1 %vm2260_vm0, %v2259_v1  ;;  %1966 = vmatprep.mubr.msk.bf16.mxu0 %vm2260_vm0, %v2259_v1 }
 0x141   : > { %v3174_v22 = vpop.f32.mrb[28].mxu1 }
 0x142   : > { %v1680_v59 = vpop.f32.mrb[29].mxu1 }
 0x143   : > { %v3178_v14 = vpop.f32.mrb[30].mxu1 }
 0x144   : > { %v1681_v3 = vpop.f32.mrb[31].mxu1 }
 0x146   : > { %1855 = vmatmul.mubr.bf16.gmra.mrb[88].mxu1 %v2981_v35  ;;  %1967 = vmatmul.mubr.bf16.gmra.mrb[84].mxu0 %v592_v36 }
 0x147   : > { %1858 = vmatprep.mubr.msk.bf16.mxu1 %vm2260_vm0, %v2259_v1  ;;  %1970 = vmatprep.mubr.msk.bf16.mxu0 %vm2260_vm0, %v2259_v1 }
 0x149   : > { %v3187_v30 = vpop.f32.mrb[32].mxu1 }
 0x14a   : > { %v1684_v51 = vpop.f32.mrb[33].mxu1 }
 0x14b   : > { %v3191_v35 = vpop.f32.mrb[34].mxu1 }
 0x14c   : > { %v1685_v56 = vpop.f32.mrb[35].mxu1 }
 0x14e   : > { %1859 = vmatmul.mubr.bf16.gmra.mrb[92].mxu1 %v3003_v9  ;;  %1971 = vmatmul.mubr.bf16.gmra.mrb[88].mxu0 %v593_v60 }
 0x14f   : > { %1862 = vmatprep.mubr.msk.bf16.mxu1 %vm2260_vm0, %v2259_v1  ;;  %1974 = vmatprep.mubr.msk.bf16.mxu0 %vm2260_vm0, %v2259_v1 }
 0x151   : > { %v3200_v10 = vpop.f32.mrb[36].mxu1 }
 0x152   : > { %v1688_v2 = vpop.f32.mrb[37].mxu1 }
 0x153   : > { %v3204_v9 = vpop.f32.mrb[38].mxu1 }
 0x154   : > { %v1689_v19 = vpop.f32.mrb[39].mxu1 }
 0x156   : > { %1863 = vmatmul.mubr.bf16.gmra.mrb[96].mxu1 %v3025_v20  ;;  %1975 = vmatmul.mubr.bf16.gmra.mrb[92].mxu0 %v594_v23 }
 0x157   : > { %1978 = vmatprep.mubr.msk.bf16.mxu0 %vm2260_vm0, %v2259_v1 }
 0x159   : > { %v3211_v34 = vpop.f32.mrb[40].mxu1 }
 0x15a   : > { %v1692_v12 = vpop.f32.mrb[41].mxu1 }
 0x15b   : > { %v3213_v24 = vpop.f32.mrb[42].mxu1 }
 0x15c   : > { %v1693_v17 = vpop.f32.mrb[43].mxu1 }
 0x15e   : > { %1979 = vmatmul.mubr.bf16.gmra.mrb[96].mxu0 %v595_v62 }
 0x161   : > { %v3215_v15 = vpop.f32.mrb[44].mxu1 }
 0x162   : > { %v1696_v20 = vpop.f32.mrb[45].mxu1 }
 0x163   : > { %v3217_v5 = vpop.f32.mrb[46].mxu1 }
 0x164   : > { %v1697_v25 = vpop.f32.mrb[47].mxu1 }
 0x169   : > { %v3219_v27 = vpop.f32.mrb[48].mxu1 }
 0x16a   : > { %v1700_v42 = vpop.f32.mrb[49].mxu1 }
 0x16b   : > { %v3222_v1 = vpop.f32.mrb[50].mxu1 }
 0x16c   : > { %v1701_v16 = vpop.f32.mrb[51].mxu1 }
 0x171   : > { %v1096_v63 = vpop.f32.mrb[0].mxu0 }
 0x172   : > { %v1998_v4 = vadd.f32 %v1096_v63, %v3083_v50  ;;  %v1884_v37 = vpop.f32.mrb[1].mxu0 }
 0x173   : > { %v1099_v6 = vpop.f32.mrb[2].mxu0 }
 0x174   : > { %1345 = vst [vmem:[%s3227_s25] sm:$0xff] %v1998_v4  ;;  %v1999_v26 = vadd.f32 %v1099_v6, %v3087_v47  ;;  %v1885_v46 = vpop.f32.mrb[3].mxu0 }
 0x176   : > { %1346 = vst [vmem:[%s3227_s25 + $0x8] sm:$0xff] %v1999_v26 }
 0x179   : > { %v1104_v49 = vpop.f32.mrb[4].mxu0 }
 0x17a   : > { %v2000_v21 = vadd.f32 %v1104_v49, %v3096_v53  ;;  %v1888_v45 = vpop.f32.mrb[5].mxu0 }
 0x17b   : > { %v1107_v50 = vpop.f32.mrb[6].mxu0 }
 0x17c   : > { %1347 = vst [vmem:[%s3227_s25 + $0x10] sm:$0xff] %v2000_v21  ;;  %v2001_v13 = vadd.f32 %v1107_v50, %v3100_v18  ;;  %v1889_v36 = vpop.f32.mrb[7].mxu0 }
 0x17e   : > { %1348 = vst [vmem:[%s3227_s25 + $0x18] sm:$0xff] %v2001_v13 }
 0x181   : > { %v1112_v59 = vpop.f32.mrb[8].mxu0 }
 0x182   : > { %v2002_v39 = vadd.f32 %v1112_v59, %v3109_v7  ;;  %v1892_v32 = vpop.f32.mrb[9].mxu0 }
 0x183   : > { %v1115_v47 = vpop.f32.mrb[10].mxu0 }
 0x184   : > { %1349 = vst [vmem:[%s3227_s25 + $0x20] sm:$0xff] %v2002_v39  ;;  %v2003_v3 = vadd.f32 %v1115_v47, %v3113_v58  ;;  %v1893_v28 = vpop.f32.mrb[11].mxu0 }
 0x186   : > { %1350 = vst [vmem:[%s3227_s25 + $0x28] sm:$0xff] %v2003_v3 }
 0x189   : > { %v1120_v53 = vpop.f32.mrb[12].mxu0 }
 0x18a   : > { %v2004_v33 = vadd.f32 %v1120_v53, %v3122_v41  ;;  %v1896_v60 = vpop.f32.mrb[13].mxu0 }
 0x18b   : > { %v1123_v18 = vpop.f32.mrb[14].mxu0 }
 0x18c   : > { %1351 = vst [vmem:[%s3227_s25 + $0x30] sm:$0xff] %v2004_v33  ;;  %v2005_v51 = vadd.f32 %v1123_v18, %v3126_v43  ;;  %v1897_v8 = vpop.f32.mrb[15].mxu0 }
 0x18e   : > { %1352 = vst [vmem:[%s3227_s25 + $0x38] sm:$0xff] %v2005_v51 }
 0x191   : > { %v1128_v7 = vpop.f32.mrb[16].mxu0 }
 0x192   : > { %v2006_v48 = vadd.f32 %v1128_v7, %v3135_v31  ;;  %v1900_v56 = vpop.f32.mrb[17].mxu0 }
 0x193   : > { %v1131_v58 = vpop.f32.mrb[18].mxu0 }
 0x194   : > { %1353 = vst [vmem:[%s3227_s25 + $0x40] sm:$0xff] %v2006_v48  ;;  %v2007_v38 = vadd.f32 %v1131_v58, %v3139_v52  ;;  %v1901_v44 = vpop.f32.mrb[19].mxu0 }
 0x196   : > { %1354 = vst [vmem:[%s3227_s25 + $0x48] sm:$0xff] %v2007_v38 }
 0x199   : > { %v1136_v41 = vpop.f32.mrb[20].mxu0 }
 0x19a   : > { %v2008_v23 = vadd.f32 %v1136_v41, %v3148_v40  ;;  %v1904_v2 = vpop.f32.mrb[21].mxu0 }
 0x19b   : > { %v1139_v43 = vpop.f32.mrb[22].mxu0 }
 0x19c   : > { %1355 = vst [vmem:[%s3227_s25 + $0x50] sm:$0xff] %v2008_v23  ;;  %v2009_v55 = vadd.f32 %v1139_v43, %v3152_v29  ;;  %v1905_v57 = vpop.f32.mrb[23].mxu0 }
 0x19e   : > { %1356 = vst [vmem:[%s3227_s25 + $0x58] sm:$0xff] %v2009_v55 }
 0x1a1   : > { %v1144_v31 = vpop.f32.mrb[24].mxu0 }
 0x1a2   : > { %v2010_v19 = vadd.f32 %v1144_v31, %v3161_v54  ;;  %v1908_v61 = vpop.f32.mrb[25].mxu0 }
 0x1a3   : > { %v1147_v52 = vpop.f32.mrb[26].mxu0 }
 0x1a4   : > { %1357 = vst [vmem:[%s3227_s25 + $0x60] sm:$0xff] %v2010_v19  ;;  %v2011_v11 = vadd.f32 %v1147_v52, %v3165_v0  ;;  %v1909_v62 = vpop.f32.mrb[27].mxu0 }
 0x1a6   : > { %1358 = vst [vmem:[%s3227_s25 + $0x68] sm:$0xff] %v2011_v11 }
 0x1a9   : > { %v1152_v40 = vpop.f32.mrb[28].mxu0 }
 0x1aa   : > { %v2012_v12 = vadd.f32 %v1152_v40, %v3174_v22  ;;  %v1912_v17 = vpop.f32.mrb[29].mxu0 }
 0x1ab   : > { %v1155_v29 = vpop.f32.mrb[30].mxu0 }
 0x1ac   : > { %1359 = vst [vmem:[%s3227_s25 + $0x70] sm:$0xff] %v2012_v12  ;;  %v2013_v20 = vadd.f32 %v1155_v29, %v3178_v14  ;;  %v1913_v25 = vpop.f32.mrb[31].mxu0 }
 0x1ae   : > { %1360 = vst [vmem:[%s3227_s25 + $0x78] sm:$0xff] %v2013_v20 }
 0x1b1   : > { %v1160_v54 = vpop.f32.mrb[32].mxu0 }
 0x1b2   : > { %v2014_v42 = vadd.f32 %v1160_v54, %v3187_v30  ;;  %v1916_v16 = vpop.f32.mrb[33].mxu0 }
 0x1b3   : > { %v1163_v0 = vpop.f32.mrb[34].mxu0 }
 0x1b4   : > { %1361 = vst [vmem:[%s3227_s25 + $0x80] sm:$0xff] %v2014_v42  ;;  %v2015_v63 = vadd.f32 %v1163_v0, %v3191_v35  ;;  %v1917_v4 = vpop.f32.mrb[35].mxu0 }
 0x1b6   : > { %1362 = vst [vmem:[%s3227_s25 + $0x88] sm:$0xff] %v2015_v63 }
 0x1b9   : > { %v1168_v22 = vpop.f32.mrb[36].mxu0 }
 0x1ba   : > { %v2016_v37 = vadd.f32 %v1168_v22, %v3200_v10  ;;  %v1920_v6 = vpop.f32.mrb[37].mxu0 }
 0x1bb   : > { %v1171_v14 = vpop.f32.mrb[38].mxu0 }
 0x1bc   : > { %1363 = vst [vmem:[%s3227_s25 + $0x90] sm:$0xff] %v2016_v37  ;;  %v2017_v26 = vadd.f32 %v1171_v14, %v3204_v9  ;;  %v1921_v46 = vpop.f32.mrb[39].mxu0 }
 0x1be   : > { %1364 = vst [vmem:[%s3227_s25 + $0x98] sm:$0xff] %v2017_v26 }
 0x1c1   : > { %v1176_v30 = vpop.f32.mrb[40].mxu0 }
 0x1c2   : > { %v2018_v49 = vadd.f32 %v1176_v30, %v3211_v34  ;;  %v1924_v21 = vpop.f32.mrb[41].mxu0 }
 0x1c3   : > { %v1179_v35 = vpop.f32.mrb[42].mxu0 }
 0x1c4   : > { %1365 = vst [vmem:[%s3227_s25 + $0xa0] sm:$0xff] %v2018_v49  ;;  %v2019_v45 = vadd.f32 %v1179_v35, %v3213_v24  ;;  %v1925_v50 = vpop.f32.mrb[43].mxu0 }
 0x1c6   : > { %1366 = vst [vmem:[%s3227_s25 + $0xa8] sm:$0xff] %v2019_v45 }
 0x1c9   : > { %v1184_v10 = vpop.f32.mrb[44].mxu0 }
 0x1ca   : > { %v2020_v13 = vadd.f32 %v1184_v10, %v3215_v15  ;;  %v1928_v36 = vpop.f32.mrb[45].mxu0 }
 0x1cb   : > { %v1187_v59 = vpop.f32.mrb[46].mxu0 }
 0x1cc   : > { %1367 = vst [vmem:[%s3227_s25 + $0xb0] sm:$0xff] %v2020_v13  ;;  %v2021_v9 = vadd.f32 %v1187_v59, %v3217_v5  ;;  %v1929_v39 = vpop.f32.mrb[47].mxu0 }
 0x1ce   : > { %1368 = vst [vmem:[%s3227_s25 + $0xb8] sm:$0xff] %v2021_v9 }
 0x1d1   : > { %v967_v34 = vpop.f32.mrb[52].mxu1  ;;  %v1192_v32 = vpop.f32.mrb[48].mxu0 }
 0x1d2   : > { %v2022_v47 = vadd.f32 %v1192_v32, %v3219_v27  ;;  %v1820_v3 = vpop.f32.mrb[53].mxu1  ;;  %v1932_v24 = vpop.f32.mrb[49].mxu0 }
 0x1d3   : > { %v970_v28 = vpop.f32.mrb[54].mxu1  ;;  %v1195_v53 = vpop.f32.mrb[50].mxu0 }
 0x1d4   : > { %1369 = vst [vmem:[%s3227_s25 + $0xc0] sm:$0xff] %v2022_v47  ;;  %v2023_v15 = vadd.f32 %v1195_v53, %v3222_v1  ;;  %v1821_v33 = vpop.f32.mrb[55].mxu1  ;;  %v1933_v60 = vpop.f32.mrb[51].mxu0 }
 0x1d6   : > { %1370 = vst [vmem:[%s3227_s25 + $0xc8] sm:$0xff] %v2023_v15 }
 0x1d9   : > { %v975_v18 = vpop.f32.mrb[56].mxu1  ;;  %v1200_v5 = vpop.f32.mrb[52].mxu0 }
 0x1da   : > { %v2024_v51 = vadd.f32 %v1200_v5, %v967_v34  ;;  %v1824_v8 = vpop.f32.mrb[57].mxu1  ;;  %v1936_v7 = vpop.f32.mrb[53].mxu0 }
 0x1db   : > { %v978_v48 = vpop.f32.mrb[58].mxu1  ;;  %v1203_v27 = vpop.f32.mrb[54].mxu0 }
 0x1dc   : > { %1371 = vst [vmem:[%s3227_s25 + $0xd0] sm:$0xff] %v2024_v51  ;;  %v2025_v56 = vadd.f32 %v1203_v27, %v970_v28  ;;  %v1825_v58 = vpop.f32.mrb[59].mxu1  ;;  %v1937_v38 = vpop.f32.mrb[55].mxu0 }
 0x1de   : > { %1372 = vst [vmem:[%s3227_s25 + $0xd8] sm:$0xff] %v2025_v56 }
 0x1e1   : > { %v983_v44 = vpop.f32.mrb[60].mxu1  ;;  %v1208_v41 = vpop.f32.mrb[56].mxu0 }
 0x1e2   : > { %v2026_v1 = vadd.f32 %v1208_v41, %v975_v18  ;;  %v1828_v23 = vpop.f32.mrb[61].mxu1  ;;  %v1940_v2 = vpop.f32.mrb[57].mxu0 }
 0x1e3   : > { %v986_v43 = vpop.f32.mrb[62].mxu1  ;;  %v1211_v55 = vpop.f32.mrb[58].mxu0 }
 0x1e4   : > { %1373 = vst [vmem:[%s3227_s25 + $0xe0] sm:$0xff] %v2026_v1  ;;  %v2027_v57 = vadd.f32 %v1211_v55, %v978_v48  ;;  %v1829_v31 = vpop.f32.mrb[63].mxu1  ;;  %v1941_v19 = vpop.f32.mrb[59].mxu0 }
 0x1e6   : > { %1374 = vst [vmem:[%s3227_s25 + $0xe8] sm:$0xff] %v2027_v57 }
 0x1e9   : > { %v991_v61 = vpop.f32.mrb[64].mxu1  ;;  %v1216_v52 = vpop.f32.mrb[60].mxu0 }
 0x1ea   : > { %v2028_v11 = vadd.f32 %v1216_v52, %v983_v44  ;;  %v1832_v62 = vpop.f32.mrb[65].mxu1  ;;  %v1944_v40 = vpop.f32.mrb[61].mxu0 }
 0x1eb   : > { %v994_v12 = vpop.f32.mrb[66].mxu1  ;;  %v1219_v17 = vpop.f32.mrb[62].mxu0 }
 0x1ec   : > { %1375 = vst [vmem:[%s3227_s25 + $0xf0] sm:$0xff] %v2028_v11  ;;  %v2029_v29 = vadd.f32 %v1219_v17, %v986_v43  ;;  %v1833_v20 = vpop.f32.mrb[67].mxu1  ;;  %v1945_v25 = vpop.f32.mrb[63].mxu0 }
 0x1ee   : > { %1376 = vst [vmem:[%s3227_s25 + $0xf8] sm:$0xff] %v2029_v29 }
 0x1f1   : > { %v999_v54 = vpop.f32.mrb[68].mxu1  ;;  %v1224_v42 = vpop.f32.mrb[64].mxu0 }
 0x1f2   : > { %v2030_v16 = vadd.f32 %v1224_v42, %v991_v61  ;;  %v1836_v0 = vpop.f32.mrb[69].mxu1  ;;  %v1948_v63 = vpop.f32.mrb[65].mxu0 }
 0x1f3   : > { %v1002_v4 = vpop.f32.mrb[70].mxu1  ;;  %v1227_v22 = vpop.f32.mrb[66].mxu0 }
 0x1f4   : > { %1377 = vst [vmem:[%s3227_s25 + $0x100] sm:$0xff] %v2030_v16  ;;  %v2031_v37 = vadd.f32 %v1227_v22, %v994_v12  ;;  %v1837_v6 = vpop.f32.mrb[71].mxu1  ;;  %v1949_v14 = vpop.f32.mrb[67].mxu0 }
 0x1f6   : > { %1378 = vst [vmem:[%s3227_s25 + $0x108] sm:$0xff] %v2031_v37 }
 0x1f9   : > { %v1007_v26 = vpop.f32.mrb[72].mxu1  ;;  %v1232_v46 = vpop.f32.mrb[68].mxu0 }
 0x1fa   : > { %v2032_v30 = vadd.f32 %v1232_v46, %v999_v54  ;;  %v1840_v49 = vpop.f32.mrb[73].mxu1  ;;  %v1952_v21 = vpop.f32.mrb[69].mxu0 }
 0x1fb   : > { %v1010_v35 = vpop.f32.mrb[74].mxu1  ;;  %v1235_v45 = vpop.f32.mrb[70].mxu0 }
 0x1fc   : > { %1379 = vst [vmem:[%s3227_s25 + $0x110] sm:$0xff] %v2032_v30  ;;  %v2033_v50 = vadd.f32 %v1235_v45, %v1002_v4  ;;  %v1841_v10 = vpop.f32.mrb[75].mxu1  ;;  %v1953_v13 = vpop.f32.mrb[71].mxu0 }
 0x1fe   : > { %1380 = vst [vmem:[%s3227_s25 + $0x118] sm:$0xff] %v2033_v50 }
 0x201   : > { %v1015_v36 = vpop.f32.mrb[76].mxu1  ;;  %v1240_v59 = vpop.f32.mrb[72].mxu0 }
 0x202   : > { %v2034_v9 = vadd.f32 %v1240_v59, %v1007_v26  ;;  %v1844_v39 = vpop.f32.mrb[77].mxu1  ;;  %v1956_v34 = vpop.f32.mrb[73].mxu0 }
 0x203   : > { %v1018_v32 = vpop.f32.mrb[78].mxu1  ;;  %v1243_v47 = vpop.f32.mrb[74].mxu0 }
 0x204   : > { %1381 = vst [vmem:[%s3227_s25 + $0x120] sm:$0xff] %v2034_v9  ;;  %v2035_v3 = vadd.f32 %v1243_v47, %v1010_v35  ;;  %v1845_v24 = vpop.f32.mrb[79].mxu1  ;;  %v1957_v28 = vpop.f32.mrb[75].mxu0 }
 0x206   : > { %1382 = vst [vmem:[%s3227_s25 + $0x128] sm:$0xff] %v2035_v3 }
 0x209   : > { %v1023_v53 = vpop.f32.mrb[80].mxu1  ;;  %v1248_v15 = vpop.f32.mrb[76].mxu0 }
 0x20a   : > { %v2036_v33 = vadd.f32 %v1248_v15, %v1015_v36  ;;  %v1848_v60 = vpop.f32.mrb[81].mxu1  ;;  %v1960_v18 = vpop.f32.mrb[77].mxu0 }
 0x20b   : > { %v1026_v5 = vpop.f32.mrb[82].mxu1  ;;  %v1251_v51 = vpop.f32.mrb[78].mxu0 }
 0x20c   : > { %1383 = vst [vmem:[%s3227_s25 + $0x130] sm:$0xff] %v2036_v33  ;;  %v2037_v8 = vadd.f32 %v1251_v51, %v1018_v32  ;;  %v1849_v7 = vpop.f32.mrb[83].mxu1  ;;  %v1961_v48 = vpop.f32.mrb[79].mxu0 }
 0x20e   : > { %1384 = vst [vmem:[%s3227_s25 + $0x138] sm:$0xff] %v2037_v8 }
 0x211   : > { %v1031_v27 = vpop.f32.mrb[84].mxu1  ;;  %v1256_v56 = vpop.f32.mrb[80].mxu0 }
 0x212   : > { %v2038_v58 = vadd.f32 %v1256_v56, %v1023_v53  ;;  %v1852_v38 = vpop.f32.mrb[85].mxu1  ;;  %v1964_v44 = vpop.f32.mrb[81].mxu0 }
 0x213   : > { %v1034_v41 = vpop.f32.mrb[86].mxu1  ;;  %v1259_v1 = vpop.f32.mrb[82].mxu0 }
 0x214   : > { %1385 = vst [vmem:[%s3227_s25 + $0x140] sm:$0xff] %v2038_v58  ;;  %v2039_v23 = vadd.f32 %v1259_v1, %v1026_v5  ;;  %v1853_v2 = vpop.f32.mrb[87].mxu1  ;;  %v1965_v43 = vpop.f32.mrb[83].mxu0 }
 0x216   : > { %1386 = vst [vmem:[%s3227_s25 + $0x148] sm:$0xff] %v2039_v23 }
 0x219   : > { %v1039_v55 = vpop.f32.mrb[88].mxu1  ;;  %v1264_v57 = vpop.f32.mrb[84].mxu0 }
 0x21a   : > { %v2040_v31 = vadd.f32 %v1264_v57, %v1031_v27  ;;  %v1856_v19 = vpop.f32.mrb[89].mxu1  ;;  %v1968_v61 = vpop.f32.mrb[85].mxu0 }
 0x21b   : > { %v1042_v52 = vpop.f32.mrb[90].mxu1  ;;  %v1267_v11 = vpop.f32.mrb[86].mxu0 }
 0x21c   : > { %1387 = vst [vmem:[%s3227_s25 + $0x150] sm:$0xff] %v2040_v31  ;;  %v2041_v62 = vadd.f32 %v1267_v11, %v1034_v41  ;;  %v1857_v40 = vpop.f32.mrb[91].mxu1  ;;  %v1969_v12 = vpop.f32.mrb[87].mxu0 }
 0x21e   : > { %1388 = vst [vmem:[%s3227_s25 + $0x158] sm:$0xff] %v2041_v62 }
 0x221   : > { %v1047_v17 = vpop.f32.mrb[92].mxu1  ;;  %v1272_v29 = vpop.f32.mrb[88].mxu0 }
 0x222   : > { %v2042_v20 = vadd.f32 %v1272_v29, %v1039_v55  ;;  %v1860_v25 = vpop.f32.mrb[93].mxu1  ;;  %v1972_v54 = vpop.f32.mrb[89].mxu0 }
 0x223   : > { %v1050_v42 = vpop.f32.mrb[94].mxu1  ;;  %v1275_v16 = vpop.f32.mrb[90].mxu0 }
 0x224   : > { %1389 = vst [vmem:[%s3227_s25 + $0x160] sm:$0xff] %v2042_v20  ;;  %v2043_v0 = vadd.f32 %v1275_v16, %v1042_v52  ;;  %v1861_v63 = vpop.f32.mrb[95].mxu1  ;;  %v1973_v4 = vpop.f32.mrb[91].mxu0 }
 0x226   : > { %1390 = vst [vmem:[%s3227_s25 + $0x168] sm:$0xff] %v2043_v0 }
 0x229   : > { %v1055_v22 = vpop.f32.mrb[96].mxu1  ;;  %v1280_v37 = vpop.f32.mrb[92].mxu0 }
 0x22a   : > { %v2044_v6 = vadd.f32 %v1280_v37, %v1047_v17  ;;  %v1864_v14 = vpop.f32.mrb[97].mxu1  ;;  %v1976_v26 = vpop.f32.mrb[93].mxu0 }
 0x22b   : > { %v1058_v46 = vpop.f32.mrb[98].mxu1  ;;  %v1283_v30 = vpop.f32.mrb[94].mxu0 }
 0x22c   : > { %1391 = vst [vmem:[%s3227_s25 + $0x170] sm:$0xff] %v2044_v6  ;;  %v2045_v49 = vadd.f32 %v1283_v30, %v1050_v42  ;;  %v1865_v21 = vpop.f32.mrb[99].mxu1  ;;  %v1977_v35 = vpop.f32.mrb[95].mxu0 }
 0x22e   : > { %1392 = vst [vmem:[%s3227_s25 + $0x178] sm:$0xff] %v2045_v49 }
 0x231   : > { %v1288_v45 = vpop.f32.mrb[96].mxu0 }
 0x232   : > { %v2046_v50 = vadd.f32 %v1288_v45, %v1055_v22  ;;  %v1980_v10 = vpop.f32.mrb[97].mxu0 }
 0x233   : > { %v1291_v13 = vpop.f32.mrb[98].mxu0 }
 0x234   : > { %1393 = vst [vmem:[%s3227_s25 + $0x180] sm:$0xff] %v2046_v50  ;;  %v2047_v36 = vadd.f32 %v1291_v13, %v1058_v46  ;;  %v1981_v59 = vpop.f32.mrb[99].mxu0 }
 0x236   : > { %1394 = vst [vmem:[%s3227_s25 + $0x188] sm:$0xff] %v2047_v36 }
 0x237   : > { %2208 = shalt.err (!%p2205_p3)
}
 0x238   : > { %s2209_s11 = scalar_lea.hbm %s3307_s30, 6400  ;;  %s2213_s18 = scalar_lea.hbm %s3357_s1, 12800 }
 0x239   : > { %p2210_p4 = scmp.ne.s32.totalorder %s3307_s30, %s2209_s11  ;;  %p2214_p9 = scmp.lt.u32.totalorder %s3307_s30, %s3357_s1 }
 0x23a   : > { %p2215_p10 = scmp.lt.u32.totalorder %s2213_s18, %s2209_s11  ;;  %p2217_p12 = scmp.lt.u32.totalorder %s2209_s11, %s3307_s30 }
 0x23b   : > { %p2211_p7 = pnand %p2210_p4, %p2313_p5 }
 0x23c   : > { %p2216_p11 = por %p2215_p10, %p2214_p9 }
 0x23d   : > { %p2212_p8 = pneg %p2211_p7 }
 0x23e   : > { %p2218_p13 = por %p2217_p12, %p2216_p11 }
 0x240   : > { %p2219_p0 = pnand %p2218_p13, %p2212_p8 }
 0x242   : > { %2222 = shalt.err (!%p2219_p0)
}
 0x243   : > { %s2263_s21 = smov 128   ;;  %s2264_s22 = smov 8  }
 0x244   : > { %2151 = dma.vmem_to_hbm [thread:$0]  (%p2313_p5), %s3309_s27, 6400, %s3307_s30, %s3315_s2, %s2263_s21, %s2263_s21, %s2264_s22  }
 0x245 PF: > { %p2157_p1 = scmp.ge.s32.totalorder %s2257_s9, 2  ;;  %s1424_s23 = sand.u32 1, %s2245_s6  }
 0x246   : > { %s1425_s24 = scalar_lea.sflag [#allocation3], %s1424_s23 }
 0x247   : > { %p2154_p2 = pnand %p2157_p1, %p2317_p6 }
 0x249   : > { %2240 = dma.done.wait (!%p2154_p2), %s1425_s24, 6400  }
 0x24a   : > { %2242 = vsyncadd (!%p2154_p2), %s1425_s24, 4294960896  ;;  %p11_p3 = scmp.ge.s32.totalorder %s2300_s12, 4   ;;  %s3381_s6 = smov %s2249_s7 }
 0x24b   : > { %s3382_s7 = smov %s2253_s8  ;;  %s3383_s8 = smov %s2311_s15 }
 0x24c   : > { %s3384_s9 = smov %s2300_s12  ;;  %13 = sbr.rel (!%p11_p3) target bundleno = 3 (0x3), region = 59 }
 0x253   :  { %1430 = vsyncpa [#allocation3], 1 }
 0x254   :  { %1432 = vsyncpa [#allocation3 + $0x1], 1 }

</bundles_post_ra>
